<compile_context>
chip_gen: v7x
topology: tpu7x:2x2x1
jax: 0.10.0
libtpu: 0.0.40
codegen_flags: <defaults>
</compile_context>

<pallas_src>
import jax
import jax.numpy as jnp
from jax.experimental import pallas as pl
from jax.experimental.pallas import tpu as pltpu

MAP_HID = [32, 32]   # config.nn_map
RED_HID = [32, 32]   # config.nn_red


def _round_up(v, m):
    return -(-v // m) * m


def _kernel(x_ref, w0_ref, b0_ref, w1_ref, b1_ref, wr0_ref, br0_ref,
            wr1_ref, brb1_ref, wr2t_ref, br2t_ref, out_ref):
    """Whole PermInvNet forward for one batch tile: 5 matmuls, no loops."""
    # Raw observation block, cast to bf16 in-kernel (saves a wrapper HBM pass).
    x = x_ref[...].astype(jnp.bfloat16)                       # (TB, L)

    # Mapper layers 0+1 for all slots at once (block-diagonal weights); aux
    # features ride along in the trailing 2*A "carry" columns.
    h = jnp.dot(x, w0_ref[...], preferred_element_type=jnp.float32)
    h = jnp.maximum(h + b0_ref[...], 0.0)                     # (TB, N0) f32
    h = jnp.dot(h.astype(jnp.bfloat16), w1_ref[...],
                preferred_element_type=jnp.float32)
    h = jnp.maximum(h + b1_ref[...], 0.0)                     # (TB, N1) f32

    # Reducer layer 0: mapper output layer, slot-mean and aux term are all
    # folded into wr0 (built in the wrapper).
    z = jnp.dot(h.astype(jnp.bfloat16), wr0_ref[...],
                preferred_element_type=jnp.float32)
    z = jnp.maximum(z + br0_ref[...], 0.0)                    # (TB, R0w) f32

    # Reducer layer 1, zero-padded to 128 output lanes so the transpose below
    # is fully (8,128)-aligned.
    z = jnp.dot(z.astype(jnp.bfloat16), wr1_ref[...],
                preferred_element_type=jnp.float32)
    z = jnp.maximum(z + brb1_ref[...], 0.0)                   # (TB, ZP) f32

    # Final layer computed transposed -> (out_space, TB) lane-dense store.
    zt = jnp.transpose(z).astype(jnp.bfloat16)                # (ZP, TB)
    out = jnp.dot(wr2t_ref[...], zt, preferred_element_type=jnp.float32)
    out_ref[...] = out + br2t_ref[...]                        # (out_space, TB)


def init_params(key, map_in_size, aux_size, out_space):
    """Deterministic PyTorch-Linear-style init. Weights stored as (in, out)."""
    map_sizes = [map_in_size] + MAP_HID + [1]
    red_sizes = [1 + aux_size] + RED_HID + [out_space]
    n_layers = (len(map_sizes) - 1) + (len(red_sizes) - 1)
    keys = jax.random.split(key, 2 * n_layers)

    def linear(kw, kb, fan_in, fan_out):
        bound = 1.0 / float(fan_in) ** 0.5
        w = jax.random.uniform(kw, (fan_in, fan_out), jnp.float32, -bound, bound)
        b = jax.random.uniform(kb, (1, fan_out), jnp.float32, -bound, bound)
        return w, b

    k = 0
    mapper, reducer = [], []
    for j in range(len(map_sizes) - 1):
        mapper.append(linear(keys[k], keys[k + 1], map_sizes[j], map_sizes[j + 1]))
        k += 2
    for j in range(len(red_sizes) - 1):
        reducer.append(linear(keys[k], keys[k + 1], red_sizes[j], red_sizes[j + 1]))
        k += 2
    return mapper, reducer


def _fold_weights(mapper, reducer, num_slots, aux_size):
    """Build block-diagonal / folded weights (trace-time only, tiny arrays)."""
    (w0, b0), (w1, b1), (w2, b2) = mapper
    (R0, rb0), (r1, rb1), (r2, rb2) = reducer
    S, A = num_slots, aux_size
    F, H0 = w0.shape
    H1 = w1.shape[1]
    R0w, R1w = R0.shape[1], r1.shape[1]
    out_space = r2.shape[1]
    f32 = jnp.float32
    eyeS = jnp.eye(S, dtype=f32)

    # Block-diagonal mapper weights consuming the *un-permuted* observation:
    # raw column j (< S*F) belongs to slot j % S, feature j // S, so row
    # j = f*S + s carries w0[f, :] into the slot-s output columns.
    w0blk = jnp.einsum('st,fh->fsth', eyeS, w0).reshape(S * F, S * H0)
    w1blk = jnp.einsum('st,gh->sgth', eyeS, w1).reshape(S * H0, S * H1)
    b0e = jnp.tile(b0, (1, S))                         # (1, S*H0)
    b1e = jnp.tile(b1, (1, S))                         # (1, S*H1)

    # Mapper's final (width-1) layer + the slot mean folded into reducer L0:
    # mean_s(h_s @ w2 + b2) @ R0[:1] == h_all @ (tile(w2@R0[:1], S)/S) + b2@R0[:1].
    wfold = w2 @ R0[:1, :]                             # (H1, R0w)
    wr0 = jnp.tile(wfold, (S, 1)) * (1.0 / S)          # (S*H1, R0w)
    br0 = b2 @ R0[:1, :] + rb0                         # (1, R0w)

    if A > 0:
        # aux rides through the mapper layers as (relu(a), relu(-a)) carry
        # columns; reducer L0 recombines them with +/- R0[1:] (exact).
        eyeA = jnp.eye(A, dtype=f32)
        w0e = jnp.block([[w0blk, jnp.zeros((S * F, 2 * A), f32)],
                         [jnp.zeros((A, S * H0), f32),
                          jnp.concatenate([eyeA, -eyeA], axis=1)]])
        w1e = jnp.block([[w1blk, jnp.zeros((S * H0, 2 * A), f32)],
                         [jnp.zeros((2 * A, S * H1), f32),
                          jnp.eye(2 * A, dtype=f32)]])
        raux = R0[1:, :]
        wr0e = jnp.concatenate([wr0, raux, -raux], axis=0)
        b0e = jnp.concatenate([b0e, jnp.zeros((1, 2 * A), f32)], axis=1)
        b1e = jnp.concatenate([b1e, jnp.zeros((1, 2 * A), f32)], axis=1)
    else:
        w0e, w1e, wr0e = w0blk, w1blk, wr0

    # Reducer layer 1 zero-padded to a multiple of 128 lanes (lane-dense
    # activation + aligned transpose); final layer pre-transposed.
    ZP = _round_up(R1w, 128)
    r1p = jnp.concatenate([r1, jnp.zeros((R0w, ZP - R1w), f32)], axis=1)
    rb1p = jnp.concatenate([rb1, jnp.zeros((1, ZP - R1w), f32)], axis=1)
    r2tp = jnp.concatenate([r2.T, jnp.zeros((out_space, ZP - R1w), f32)], axis=1)
    rb2t = rb2.T                                       # (out_space, 1)

    bf16 = jnp.bfloat16
    weights = (w0e.astype(bf16), b0e, w1e.astype(bf16), b1e,
               wr0e.astype(bf16), br0, r1p.astype(bf16), rb1p,
               r2tp.astype(bf16), rb2t)
    return weights, out_space


def perm_inv_net_forward(observation, mapper, reducer, num_slots, aux_size,
                         batch_tile=1024):
    """Batch-tiled Pallas forward; all permutation/fold logic is in weights."""
    observation = observation.astype(jnp.float32)
    B, L = observation.shape
    S = num_slots
    assert (L - aux_size) % S == 0

    weights, out_space = _fold_weights(mapper, reducer, S, aux_size)
    assert weights[0].shape[0] == L
    N0, N1 = weights[0].shape[1], weights[2].shape[1]
    R0w, ZP = weights[4].shape[1], weights[6].shape[1]

    # Batch tile: multiple of 128 (lane-dense transposed store + aligned
    # in-kernel transpose); capped near half the batch so a v7x megacore
    # gets at least two "parallel" tiles when the batch is large enough.
    TB = max(128, (batch_tile // 128) * 128)
    TB = min(TB, max(128, _round_up(-(-B // 2), 128)))
    n_tiles = pl.cdiv(B, TB)   # ragged last tile handled by Pallas masking

    in_specs = [pl.BlockSpec((TB, L), lambda i: (i, 0))]
    in_specs += [pl.BlockSpec(w.shape, lambda i: (0, 0)) for w in weights]

    flops = 2 * n_tiles * TB * (L * N0 + N0 * N1 + N1 * R0w
                                + R0w * ZP + ZP * out_space)
    bytes_accessed = (int(observation.size) * 4 + out_space * B * 4
                      + sum(int(w.size) * w.dtype.itemsize for w in weights))
    cost = pl.CostEstimate(flops=flops, transcendentals=0,
                           bytes_accessed=bytes_accessed)

    out_t = pl.pallas_call(
        _kernel,
        out_shape=jax.ShapeDtypeStruct((out_space, B), jnp.float32),
        grid=(n_tiles,),
        in_specs=in_specs,
        out_specs=pl.BlockSpec((out_space, TB), lambda i: (0, i)),
        compiler_params=pltpu.CompilerParams(
            dimension_semantics=("parallel",),
            vmem_limit_bytes=32 * 1024 * 1024),
        cost_estimate=cost,
    )(observation, *weights)

    if out_space == 1:            # torch .squeeze(dim=-1)
        return out_t[0]           # (B,)
    return out_t.T                # (B, out_space) — tiny post-transpose


def reference_forward(observation, mapper, reducer, num_slots, aux_size):
    """Pure-JAX f32 reference matching the PyTorch forward."""
    B, obs_len = observation.shape
    F = (obs_len - aux_size) // num_slots
    elem_idx = jnp.asarray([i // F + (i % F) * num_slots
                            for i in range(obs_len - aux_size)], dtype=jnp.int32)
    x = jnp.take(observation, elem_idx, axis=1).reshape(B, num_slots, F)
    for i, (w, b) in enumerate(mapper):
        x = x @ w + b
        if i < len(mapper) - 1:
            x = jnp.maximum(x, 0.0)
    s = x[..., 0].mean(axis=-1, keepdims=True)
    if aux_size:
        s = jnp.concatenate([s, observation[:, -aux_size:]], axis=-1)
    y = s
    for i, (w, b) in enumerate(reducer):
        y = y @ w + b
        if i < len(reducer) - 1:
            y = jnp.maximum(y, 0.0)
    return y[:, 0] if y.shape[-1] == 1 else y


if __name__ == "__main__":
    key = jax.random.PRNGKey(0)
    k_param, k_obs, k2_param, k2_obs, k3_obs = jax.random.split(key, 5)

    # ---- case 1: aux features present, multi-dim output, tiny batch ----
    num_slots, map_in_size, aux_size, out_space = 8, 4, 2, 3
    observation_len = num_slots * map_in_size + aux_size          # 34
    mapper, reducer = init_params(k_param, map_in_size, aux_size, out_space)
    obs = jax.random.normal(k_obs, (2, observation_len), jnp.float32)
    out = jax.block_until_ready(
        perm_inv_net_forward(obs, mapper, reducer, num_slots, aux_size))
    ref = reference_forward(obs, mapper, reducer, num_slots, aux_size)
    assert out.shape == (2, out_space)
    assert jnp.allclose(out, ref, atol=3e-2, rtol=3e-2), (out, ref)

    # ---- case 2: no aux, scalar output (same single kernel code path) ----
    num_slots2, map_in2, aux2, out2 = 4, 8, 0, 1
    mapper2, reducer2 = init_params(k2_param, map_in2, aux2, out2)
    obs2 = jax.random.normal(k2_obs, (2, num_slots2 * map_in2), jnp.float32)
    o2 = jax.block_until_ready(
        perm_inv_net_forward(obs2, mapper2, reducer2, num_slots2, aux2))
    r2_ = reference_forward(obs2, mapper2, reducer2, num_slots2, aux2)
    assert o2.shape == (2,)
    assert jnp.allclose(o2, r2_, atol=3e-2, rtol=3e-2), (o2, r2_)

    # ---- case 3: multi-tile grid with a ragged (masked) final tile ----
    obs3 = jax.random.normal(k3_obs, (300, observation_len), jnp.float32)
    o3 = jax.block_until_ready(
        perm_inv_net_forward(obs3, mapper, reducer, num_slots, aux_size))
    r3 = reference_forward(obs3, mapper, reducer, num_slots, aux_size)
    assert o3.shape == (300, out_space)
    assert jnp.allclose(o3, r3, atol=3e-2, rtol=3e-2)

    print("KERNEL_OK")
</pallas_src>

<mosaic_0001>
module attributes {stable_mosaic.version = 11 : i64} {
  func.func @_kernel(%arg0: i32, %arg1: memref<128x34xf32, #tpu.memory_space<vmem>>, %arg2: memref<34x260xbf16, #tpu.memory_space<vmem>>, %arg3: memref<1x260xf32, #tpu.memory_space<vmem>>, %arg4: memref<260x260xbf16, #tpu.memory_space<vmem>>, %arg5: memref<1x260xf32, #tpu.memory_space<vmem>>, %arg6: memref<260x32xbf16, #tpu.memory_space<vmem>>, %arg7: memref<1x32xf32, #tpu.memory_space<vmem>>, %arg8: memref<32x128xbf16, #tpu.memory_space<vmem>>, %arg9: memref<1x128xf32, #tpu.memory_space<vmem>>, %arg10: memref<3x128xbf16, #tpu.memory_space<vmem>>, %arg11: memref<3x1xf32, #tpu.memory_space<vmem>>, %arg12: memref<3x128xf32, #tpu.memory_space<vmem>>) attributes {dimension_semantics = [#tpu.dimension_semantics<parallel>], iteration_bounds = array<i64: 1>, scalar_prefetch = 0 : i64, scratch_operands = 0 : i64, tpu.core_type = #tpu.core_type<tc>, window_params = [{transform_indices = @transform_0, window_bounds = array<i64: 128, 34>}, {pipeline_mode = #tpu.pipeline_mode<synchronous>, transform_indices = @transform_1, window_bounds = array<i64: 34, 260>}, {pipeline_mode = #tpu.pipeline_mode<synchronous>, transform_indices = @transform_2, window_bounds = array<i64: 1, 260>}, {pipeline_mode = #tpu.pipeline_mode<synchronous>, transform_indices = @transform_3, window_bounds = array<i64: 260, 260>}, {pipeline_mode = #tpu.pipeline_mode<synchronous>, transform_indices = @transform_4, window_bounds = array<i64: 1, 260>}, {pipeline_mode = #tpu.pipeline_mode<synchronous>, transform_indices = @transform_5, window_bounds = array<i64: 260, 32>}, {pipeline_mode = #tpu.pipeline_mode<synchronous>, transform_indices = @transform_6, window_bounds = array<i64: 1, 32>}, {pipeline_mode = #tpu.pipeline_mode<synchronous>, transform_indices = @transform_7, window_bounds = array<i64: 32, 128>}, {pipeline_mode = #tpu.pipeline_mode<synchronous>, transform_indices = @transform_8, window_bounds = array<i64: 1, 128>}, {pipeline_mode = #tpu.pipeline_mode<synchronous>, transform_indices = @transform_9, window_bounds = array<i64: 3, 128>}, {pipeline_mode = #tpu.pipeline_mode<synchronous>, transform_indices = @transform_10, window_bounds = array<i64: 3, 1>}, {transform_indices = @transform_11, window_bounds = array<i64: 3, 128>}]} {
    %c0 = arith.constant 0 : index
    %c0_0 = arith.constant 0 : index
    %0 = vector.load %arg1[%c0, %c0_0] : memref<128x34xf32, #tpu.memory_space<vmem>>, vector<128x34xf32>
    %1 = arith.truncf %0 : vector<128x34xf32> to vector<128x34xbf16>
    %c0_1 = arith.constant 0 : index
    %c0_2 = arith.constant 0 : index
    %2 = vector.load %arg2[%c0_1, %c0_2] : memref<34x260xbf16, #tpu.memory_space<vmem>>, vector<34x260xbf16>
    %cst = arith.constant dense<0.000000e+00> : vector<128x260xf32>
    %3 = tpu.matmul %1, %2, %cst {dimension_numbers = #tpu.dot_dimension_numbers<[1], [0], [0], [1], [0, 0, 1, 1], [], []>} : vector<128x34xbf16>, vector<34x260xbf16>, vector<128x260xf32> -> vector<128x260xf32>
    %c0_3 = arith.constant 0 : index
    %c0_4 = arith.constant 0 : index
    %4 = vector.load %arg3[%c0_3, %c0_4] : memref<1x260xf32, #tpu.memory_space<vmem>>, vector<1x260xf32>
    %5 = vector.broadcast %4 : vector<1x260xf32> to vector<128x260xf32>
    %6 = arith.addf %3, %5 : vector<128x260xf32>
    %cst_5 = arith.constant 0.000000e+00 : f32
    %7 = vector.broadcast %cst_5 : f32 to vector<128x260xf32>
    %8 = arith.maximumf %6, %7 : vector<128x260xf32>
    %9 = arith.truncf %8 : vector<128x260xf32> to vector<128x260xbf16>
    %c0_6 = arith.constant 0 : index
    %c0_7 = arith.constant 0 : index
    %10 = vector.load %arg4[%c0_6, %c0_7] : memref<260x260xbf16, #tpu.memory_space<vmem>>, vector<260x260xbf16>
    %cst_8 = arith.constant dense<0.000000e+00> : vector<128x260xf32>
    %11 = tpu.matmul %9, %10, %cst_8 {dimension_numbers = #tpu.dot_dimension_numbers<[1], [0], [0], [1], [0, 0, 1, 1], [], []>} : vector<128x260xbf16>, vector<260x260xbf16>, vector<128x260xf32> -> vector<128x260xf32>
    %c0_9 = arith.constant 0 : index
    %c0_10 = arith.constant 0 : index
    %12 = vector.load %arg5[%c0_9, %c0_10] : memref<1x260xf32, #tpu.memory_space<vmem>>, vector<1x260xf32>
    %13 = vector.broadcast %12 : vector<1x260xf32> to vector<128x260xf32>
    %14 = arith.addf %11, %13 : vector<128x260xf32>
    %cst_11 = arith.constant 0.000000e+00 : f32
    %15 = vector.broadcast %cst_11 : f32 to vector<128x260xf32>
    %16 = arith.maximumf %14, %15 : vector<128x260xf32>
    %17 = arith.truncf %16 : vector<128x260xf32> to vector<128x260xbf16>
    %c0_12 = arith.constant 0 : index
    %c0_13 = arith.constant 0 : index
    %18 = vector.load %arg6[%c0_12, %c0_13] : memref<260x32xbf16, #tpu.memory_space<vmem>>, vector<260x32xbf16>
    %cst_14 = arith.constant dense<0.000000e+00> : vector<128x32xf32>
    %19 = tpu.matmul %17, %18, %cst_14 {dimension_numbers = #tpu.dot_dimension_numbers<[1], [0], [0], [1], [0, 0, 1, 1], [], []>} : vector<128x260xbf16>, vector<260x32xbf16>, vector<128x32xf32> -> vector<128x32xf32>
    %c0_15 = arith.constant 0 : index
    %c0_16 = arith.constant 0 : index
    %20 = vector.load %arg7[%c0_15, %c0_16] : memref<1x32xf32, #tpu.memory_space<vmem>>, vector<1x32xf32>
    %21 = vector.broadcast %20 : vector<1x32xf32> to vector<128x32xf32>
    %22 = arith.addf %19, %21 : vector<128x32xf32>
    %cst_17 = arith.constant 0.000000e+00 : f32
    %23 = vector.broadcast %cst_17 : f32 to vector<128x32xf32>
    %24 = arith.maximumf %22, %23 : vector<128x32xf32>
    %25 = arith.truncf %24 : vector<128x32xf32> to vector<128x32xbf16>
    %c0_18 = arith.constant 0 : index
    %c0_19 = arith.constant 0 : index
    %26 = vector.load %arg8[%c0_18, %c0_19] : memref<32x128xbf16, #tpu.memory_space<vmem>>, vector<32x128xbf16>
    %cst_20 = arith.constant dense<0.000000e+00> : vector<128x128xf32>
    %27 = tpu.matmul %25, %26, %cst_20 {dimension_numbers = #tpu.dot_dimension_numbers<[1], [0], [0], [1], [0, 0, 1, 1], [], []>} : vector<128x32xbf16>, vector<32x128xbf16>, vector<128x128xf32> -> vector<128x128xf32>
    %c0_21 = arith.constant 0 : index
    %c0_22 = arith.constant 0 : index
    %28 = vector.load %arg9[%c0_21, %c0_22] : memref<1x128xf32, #tpu.memory_space<vmem>>, vector<1x128xf32>
    %29 = vector.broadcast %28 : vector<1x128xf32> to vector<128x128xf32>
    %30 = arith.addf %27, %29 : vector<128x128xf32>
    %cst_23 = arith.constant 0.000000e+00 : f32
    %31 = vector.broadcast %cst_23 : f32 to vector<128x128xf32>
    %32 = arith.maximumf %30, %31 : vector<128x128xf32>
    %33 = tpu.transpose %32, [1, 0] : vector<128x128xf32> -> vector<128x128xf32>
    %34 = arith.truncf %33 : vector<128x128xf32> to vector<128x128xbf16>
    %c0_24 = arith.constant 0 : index
    %c0_25 = arith.constant 0 : index
    %35 = vector.load %arg10[%c0_24, %c0_25] : memref<3x128xbf16, #tpu.memory_space<vmem>>, vector<3x128xbf16>
    %cst_26 = arith.constant dense<0.000000e+00> : vector<3x128xf32>
    %36 = tpu.matmul %35, %34, %cst_26 {dimension_numbers = #tpu.dot_dimension_numbers<[1], [0], [0], [1], [0, 0, 1, 1], [], []>} : vector<3x128xbf16>, vector<128x128xbf16>, vector<3x128xf32> -> vector<3x128xf32>
    %c0_27 = arith.constant 0 : index
    %c0_28 = arith.constant 0 : index
    %37 = vector.load %arg11[%c0_27, %c0_28] : memref<3x1xf32, #tpu.memory_space<vmem>>, vector<3x1xf32>
    %38 = vector.broadcast %37 : vector<3x1xf32> to vector<3x128xf32>
    %39 = arith.addf %36, %38 : vector<3x128xf32>
    %c0_29 = arith.constant 0 : index
    %c0_30 = arith.constant 0 : index
    %40 = vector.load %arg12[%c0_29, %c0_30] : memref<3x128xf32, #tpu.memory_space<vmem>>, vector<3x128xf32>
    tpu.vector_store %arg12[%c0_29, %c0_30], %39 {strides = array<i32>} : memref<3x128xf32, #tpu.memory_space<vmem>>, vector<3x128xf32>,
    return
  }
  func.func @transform_0(%arg0: i32) -> (i32, i32) {
    %c0_i32 = arith.constant 0 : i32
    %c0_i32_0 = arith.constant 0 : i32
    return %arg0, %c0_i32 : i32, i32
  }
  func.func @transform_1(%arg0: i32) -> (i32, i32) {
    %c0_i32 = arith.constant 0 : i32
    %c0_i32_0 = arith.constant 0 : i32
    %c0_i32_1 = arith.constant 0 : i32
    return %c0_i32, %c0_i32_0 : i32, i32
  }
  func.func @transform_2(%arg0: i32) -> (i32, i32) {
    %c0_i32 = arith.constant 0 : i32
    %c0_i32_0 = arith.constant 0 : i32
    %c0_i32_1 = arith.constant 0 : i32
    return %c0_i32, %c0_i32_0 : i32, i32
  }
  func.func @transform_3(%arg0: i32) -> (i32, i32) {
    %c0_i32 = arith.constant 0 : i32
    %c0_i32_0 = arith.constant 0 : i32
    %c0_i32_1 = arith.constant 0 : i32
    return %c0_i32, %c0_i32_0 : i32, i32
  }
  func.func @transform_4(%arg0: i32) -> (i32, i32) {
    %c0_i32 = arith.constant 0 : i32
    %c0_i32_0 = arith.constant 0 : i32
    %c0_i32_1 = arith.constant 0 : i32
    return %c0_i32, %c0_i32_0 : i32, i32
  }
  func.func @transform_5(%arg0: i32) -> (i32, i32) {
    %c0_i32 = arith.constant 0 : i32
    %c0_i32_0 = arith.constant 0 : i32
    %c0_i32_1 = arith.constant 0 : i32
    return %c0_i32, %c0_i32_0 : i32, i32
  }
  func.func @transform_6(%arg0: i32) -> (i32, i32) {
    %c0_i32 = arith.constant 0 : i32
    %c0_i32_0 = arith.constant 0 : i32
    %c0_i32_1 = arith.constant 0 : i32
    return %c0_i32, %c0_i32_0 : i32, i32
  }
  func.func @transform_7(%arg0: i32) -> (i32, i32) {
    %c0_i32 = arith.constant 0 : i32
    %c0_i32_0 = arith.constant 0 : i32
    %c0_i32_1 = arith.constant 0 : i32
    return %c0_i32, %c0_i32_0 : i32, i32
  }
  func.func @transform_8(%arg0: i32) -> (i32, i32) {
    %c0_i32 = arith.constant 0 : i32
    %c0_i32_0 = arith.constant 0 : i32
    %c0_i32_1 = arith.constant 0 : i32
    return %c0_i32, %c0_i32_0 : i32, i32
  }
  func.func @transform_9(%arg0: i32) -> (i32, i32) {
    %c0_i32 = arith.constant 0 : i32
    %c0_i32_0 = arith.constant 0 : i32
    %c0_i32_1 = arith.constant 0 : i32
    return %c0_i32, %c0_i32_0 : i32, i32
  }
  func.func @transform_10(%arg0: i32) -> (i32, i32) {
    %c0_i32 = arith.constant 0 : i32
    %c0_i32_0 = arith.constant 0 : i32
    %c0_i32_1 = arith.constant 0 : i32
    return %c0_i32, %c0_i32_0 : i32, i32
  }
  func.func @transform_11(%arg0: i32) -> (i32, i32) {
    %c0_i32 = arith.constant 0 : i32
    %c0_i32_0 = arith.constant 0 : i32
    return %c0_i32, %arg0 : i32, i32
  }
}

</mosaic_0001>

<bundles_post_ra>
// kernel: tpu_custom_call.1
= control target key start
LH: loop header
LB: loop body
LE: loop exit
PB: predicated region body
PF: predicated region fallthrough
CT: control target
= control target key end

     0   :  { %16 = vsyncpa [#allocation3], 0  ;;  %s2574_s17 = smov [#allocation2]   ;;  %s3123_s0 = inlined_call_operand.vmem [shape: f32[2,34], index: 0, kind: input, shape index: {}]   ;;  %s3124_s1 = inlined_call_operand.vmem [shape: bf16[34,260], index: 1, kind: input, shape index: {}]   ;;  %s3125_s2 = inlined_call_operand.vmem [shape: f32[1,260], index: 2, kind: input, shape index: {}]   ;;  %s3126_s3 = inlined_call_operand.hbm [shape: bf16[260,260], index: 3, kind: input, shape index: {}]   ;;  %s3127_s4 = inlined_call_operand.vmem [shape: f32[1,260], index: 4, kind: input, shape index: {}]   ;;  %s3128_s5 = inlined_call_operand.vmem [shape: bf16[260,32], index: 5, kind: input, shape index: {}]   ;;  %s3129_s6 = inlined_call_operand.vmem [shape: f32[1,32], index: 6, kind: input, shape index: {}]   ;;  %s3130_s7 = inlined_call_operand.vmem [shape: bf16[32,128], index: 7, kind: input, shape index: {}]   ;;  %s3131_s8 = inlined_call_operand.vmem [shape: f32[1,128], index: 8, kind: input, shape index: {}]   ;;  %s3132_s9 = inlined_call_operand.vmem [shape: bf16[3,128], index: 9, kind: input, shape index: {}]   ;;  %s3133_s10 = inlined_call_operand.vmem [shape: f32[3,1], index: 10, kind: input, shape index: {}]   ;;  %s3134_s11 = inlined_call_operand.vmem [shape: f32[3,2], index: 11, kind: output, shape index: {}]  }
   0x1   :  { %s28_s18 = sshll.u32 %s2574_s17, 4  ;;  %s2550_s21 = scalar_lea.hbm %s3126_s3, 6336  ;;  %s29_s18 = int_to_ptr.vmem [resolvable:$true] %s28_s18 }
   0x2   :  { %p2551_p0 = scmp.ne.s32.totalorder %s3126_s3, %s2550_s21  ;;  %p2554_p1 = scmp.lt.u32.totalorder %s2550_s21, %s3126_s3 }
   0x4   :  { %p2556_p2 = pnand %p2554_p1, %p2551_p0 }
   0x6   :  { %2559 = shalt.err (!%p2556_p2)
}
   0x7   :  { %s2560_s26 = scalar_lea.vmem %s29_s18, 6336  ;;  %p2565_p4 = scmp.lt.s32.totalorder %s29_s18, %s29_s18 }
   0x8   :  { %p2561_p3 = scmp.ne.s32.totalorder %s29_s18, %s2560_s26  ;;  %p2566_p5 = scmp.lt.s32.totalorder %s2560_s26, %s2560_s26 }
   0xa   :  { %p2567_p6 = por %p2566_p5, %p2565_p4 }
   0xc   :  { %p2568_p7 = pnand %p2567_p6, %p2561_p3 }
   0xe   :  { %2571 = shalt.err (!%p2568_p7)
}
   0xf   :  { %s2575_s27 = smov 192   ;;  %s2576_s28 = smov 12  }
  0x10   :  { %34 = dma.hbm_to_vmem [thread:$0]  %s3126_s3, 6336, %s29_s18, [#allocation3], %s2575_s27, %s2575_s27, %s2576_s28  }
  0x11   :  { %2572 = dma.done.wait [#allocation3], 6336  }
  0x12   :  { %2573 = vsyncadd [#allocation3], 4294960960  ;;  %v2577_v0 = vmov 0   ;;  %v2453_v1 = vld [vmem:[%s3124_s1 + $0x4] ss:$12 sps:$4 sm:$0xff]   ;;  %v54_v8 = vld [vmem:[%s3123_s0 + $0x8] sm:$0xff] }
  0x13   :  { %211 = vmatprep.mubr.bf16.mxu0 %v2577_v0  ;;  %2451 = vset.pattern.permute.xlu1 %v2577_v0  ;;  %v2455_v2 = vld [vmem:[%s3124_s1] ss:$12 sps:$4 sm:$0xff]   ;;  %v2456_v3 = vld [vmem:[%s3124_s1 + $0x1c] ss:$12 sps:$4 sm:$0xff]   ;;  %v85_v4 = vld [vmem:[%s3124_s1 + $0x30] sm:$0x11] }
  0x14   :  { %179 = vmatprep.subr.bf16.mxu0 %v2453_v1  ;;  %v2458_v5 = vld [vmem:[%s3124_s1 + $0x18] ss:$12 sps:$4 sm:$0xff]   ;;  %v1979_v6 = vcombine.low %v85_v4, %v85_v4  ;;  %v1980_v9 = vcombine.high %v85_v4, %v85_v4  ;;  %vm169_vm0 = vcmask 1040384   ;;  %vm144_vm1 = vcmask 277504   ;;  %v2461_v12 = vld [vmem:[%s3124_s1 + $0x8] ss:$12 sps:$4 sm:$0xff]  }
  0x15   :  { %180 = vmatpush1.bf16.msra.mxu0 %v2455_v2  ;;  %v53_v7 = vld [vmem:[%s3123_s0] sm:$0xff]  ;;  %2280 = vmatprep.subr.bf16.mxu1 %v2461_v12  ;;  %v2463_v14 = vld [vmem:[%s3124_s1 + $0x38] ss:$0 sps:$4 sm:$0x11]   ;;  %v2469_v17 = vld [vmem:[#allocation2 + $0x1c] ss:$12 sps:$4 sm:$0xff]  }
  0x16   :  { %181 = vmatprep.subr.bf16.mxu0 %v2456_v3  ;;  %v69_v10 = vpack.c.bf16 %v54_v8, %v53_v7  ;;  %v171_v11 = vsel %vm169_vm0, %v1979_v6, 0  ;;  %v2462_v13 = vld [vmem:[%s3124_s1 + $0x20] ss:$12 sps:$4 sm:$0xff]   ;;  %2281 = vmatpush3.bf16.msra.mxu1 %v2461_v12  ;;  %v2466_v16 = vld [vmem:[#allocation2 + $0x4] ss:$12 sps:$4 sm:$0xff]   ;;  %v56_v19 = vld [vmem:[%s3123_s0 + $0x18] sm:$0xff] }
  0x17   :  { %v2464_v15 = vld [vmem:[#allocation2] ss:$12 sps:$4 sm:$0xff]   ;;  %2282 = vmatprep.subr.bf16.mxu1 %v2462_v13  ;;  %v55_v18 = vld [vmem:[%s3123_s0 + $0x10] sm:$0xff]  ;;  %v177_v20 = vsel %vm169_vm0, %v2463_v14, 0  ;;  %v2467_v21 = vld [vmem:[#allocation2 + $0x18] ss:$12 sps:$4 sm:$0xff]  }
  0x18   :  { %2286 = vmatprep.mubr.msk.bf16.mxu1 %vm144_vm1, %v69_v10  ;;  %v2472_v22 = vld [vmem:[#allocation2 + $0x34] ss:$12 sps:$4 sm:$0xff]   ;;  %v70_v23 = vpack.c.bf16 %v56_v19, %v55_v18  ;;  %v58_v25 = vld [vmem:[%s3123_s0 + $0x28] sm:$0xff]  ;;  %v2470_v26 = vld [vmem:[#allocation2 + $0x30] ss:$12 sps:$4 sm:$0xff]   ;;  %vm833_vm2 = vcmask 1041408  }
  0x19   :  { %182 = vmatpush1.bf16.msra.mxu0 %v2458_v5  ;;  %v57_v24 = vld [vmem:[%s3123_s0 + $0x20] sm:$0xff]  ;;  %v2475_v28 = vld [vmem:[#allocation2 + $0x4c] ss:$12 sps:$4 sm:$0xff]   ;;  %v2473_v29 = vld [vmem:[#allocation2 + $0x48] ss:$12 sps:$4 sm:$0xff]   ;;  %vm808_vm3 = vcmask 31744  }
  0x1a   :  { %1982 = vmatprep.subr.msk.bf16.mxu0 %vm169_vm0, %v1980_v9  ;;  %2283 = vmatpush3.bf16.msra.mxu1 %v2462_v13  ;;  %v71_v27 = vpack.c.bf16 %v58_v25, %v57_v24  ;;  %v59_v30 = vld [vmem:[%s3123_s0 + $0x30] sm:$0xff]  ;;  %v60_v31 = vld [vmem:[%s3123_s0 + $0x38] sm:$0xff]  ;;  %v61_v33 = vld [vmem:[%s3123_s0 + $0x40] sm:$0xff]  ;;  %v89_v25 = vlaneseq  ;;  %vm1742_vm4 = vcmask 261120   ;;  %vm2579_vm5 = vmmov 0  }
  0x1b   :  { %2442 = vmatprep.subr.msk.bf16.mxu1 %vm169_vm0, %v2463_v14  ;;  %v2491_v32 = vld [vmem:[#allocation2 + $0xc8] ss:$12 sps:$4 sm:$0xff]   ;;  %v2478_v36 = vld [vmem:[#allocation2 + $0x64] ss:$12 sps:$4 sm:$0xff]   ;;  %v2476_v37 = vld [vmem:[#allocation2 + $0x60] ss:$12 sps:$4 sm:$0xff]   ;;  %v72_v39 = vpack.c.bf16 %v60_v31, %v59_v30 }
  0x1c   :  { %v62_v34 = vld [vmem:[%s3123_s0 + $0x48] sm:$0xff]  ;;  %v2501_v43 = vld [vmem:[#allocation2 + $0xf8] ss:$12 sps:$4 sm:$0xff]   ;;  %v63_v44 = vld [vmem:[%s3123_s0 + $0x50] sm:$0xff] }
  0x1d   :  { %184 = vmatpush1.bf16.msra.mxu0 %v171_v11  ;;  %v2492_v35 = vld [vmem:[#allocation2 + $0x8] ss:$12 sps:$4 sm:$0xff]   ;;  %v2496_v38 = vld [vmem:[#allocation2 + $0xe0] ss:$12 sps:$4 sm:$0xff]   ;;  %v73_v41 = vpack.c.bf16 %v62_v34, %v61_v33  ;;  %v64_v45 = vld [vmem:[%s3123_s0 + $0x58] sm:$0xff] }
  0x1e   :  { %843 = vmatprep.subr.bf16.mxu0 %v2466_v16  ;;  %2285 = vmatpush3.bf16.msra.mxu1 %v177_v20  ;;  %v2497_v40 = vld [vmem:[#allocation2 + $0x20] ss:$12 sps:$4 sm:$0xff]   ;;  %v2481_v42 = vld [vmem:[#allocation2 + $0x7c] ss:$12 sps:$4 sm:$0xff]   ;;  %v2479_v46 = vld [vmem:[#allocation2 + $0x78] ss:$12 sps:$4 sm:$0xff]   ;;  %v74_v54 = vpack.c.bf16 %v64_v45, %v63_v44 }
  0x1f   :  { %2115 = vmatprep.subr.bf16.mxu1 %v2491_v32  ;;  %v65_v47 = vld [vmem:[%s3123_s0 + $0x60] sm:$0xff]  ;;  %v66_v48 = vld [vmem:[%s3123_s0 + $0x68] sm:$0xff]  ;;  %v2506_v51 = vld [vmem:[#allocation2 + $0x110] ss:$12 sps:$4 sm:$0xff]  }
  0x20   :  { %1983 = vmatmul.mubr.msk.bf16.vlgmr.msra.gmra.mrb[0].mxu0 %vm144_vm1, %v69_v10  ;;  %v2484_v49 = vld [vmem:[#allocation2 + $0x94] ss:$12 sps:$4 sm:$0xff]   ;;  %v2502_v50 = vld [vmem:[#allocation2 + $0x38] ss:$12 sps:$4 sm:$0xff]   ;;  %v2482_v52 = vld [vmem:[#allocation2 + $0x90] ss:$12 sps:$4 sm:$0xff]   ;;  %v75_v56 = vpack.c.bf16 %v66_v48, %v65_v47 }
  0x21   :  { %221 = vmatprep.mubr.bf16.mxu0 %v2577_v0  ;;  %844 = vmatpush1.bf16.msra.mxu0 %v2464_v15  ;;  %v2487_v53 = vld [vmem:[#allocation2 + $0xac] ss:$12 sps:$4 sm:$0xff]   ;;  %v2507_v55 = vld [vmem:[#allocation2 + $0x50] ss:$12 sps:$4 sm:$0xff]   ;;  %v2511_v57 = vld [vmem:[#allocation2 + $0x128] ss:$12 sps:$4 sm:$0xff]  }
  0x22   :  { %845 = vmatprep.subr.bf16.mxu0 %v2469_v17  ;;  %2287 = vmatmul.mubr.msk.bf16.vlgmr.msra.gmra.mrb[0].mxu1 %vm144_vm1, %v70_v23  ;;  %v67_v58 = vld [vmem:[%s3123_s0 + $0x70] sm:$0xff]  ;;  %v68_v59 = vld [vmem:[%s3123_s0 + $0x78] sm:$0xff]  ;;  %v2516_v63 = vld [vmem:[#allocation2 + $0x140] ss:$12 sps:$4 sm:$0xff]  }
  0x23   :  { %2290 = vmatprep.mubr.msk.bf16.mxu1 %vm144_vm1, %v71_v27  ;;  %2116 = vmatpush3.bf16.msra.mxu1 %v2492_v35  ;;  %v2485_v60 = vld [vmem:[#allocation2 + $0xa8] ss:$12 sps:$4 sm:$0xff]   ;;  %v2490_v61 = vld [vmem:[#allocation2 + $0xc4] ss:$12 sps:$4 sm:$0xff]   ;;  %v2488_v1 = vld [vmem:[#allocation2 + $0xc0] ss:$12 sps:$4 sm:$0xff]   ;;  %v76_v3 = vpack.c.bf16 %v68_v59, %v67_v58 }
  0x24   :  { %2117 = vmatprep.subr.bf16.mxu1 %v2496_v38  ;;  %v2512_v62 = vld [vmem:[#allocation2 + $0x68] ss:$12 sps:$4 sm:$0xff]   ;;  %v2493_v4 = vld [vmem:[#allocation2 + $0xd8] ss:$12 sps:$4 sm:$0xff]   ;;  %v2498_v6 = vld [vmem:[#allocation2 + $0xf0] ss:$12 sps:$4 sm:$0xff]  }
  0x25   :  { %846 = vmatpush1.bf16.msra.mxu0 %v2467_v21  ;;  %v2495_v2 = vld [vmem:[#allocation2 + $0xdc] ss:$12 sps:$4 sm:$0xff]   ;;  %v2500_v5 = vld [vmem:[#allocation2 + $0xf4] ss:$12 sps:$4 sm:$0xff]   ;;  %v2505_v7 = vld [vmem:[#allocation2 + $0x10c] ss:$12 sps:$4 sm:$0xff]  }
  0x26   :  { %847 = vmatprep.subr.bf16.mxu0 %v2472_v22  ;;  %v2503_v8 = vld [vmem:[#allocation2 + $0x108] ss:$12 sps:$4 sm:$0xff]   ;;  %v2510_v9 = vld [vmem:[#allocation2 + $0x124] ss:$12 sps:$4 sm:$0xff]   ;;  %v2508_v10 = vld [vmem:[#allocation2 + $0x120] ss:$12 sps:$4 sm:$0xff]  }
  0x27   :  { %2118 = vmatpush3.bf16.msra.mxu1 %v2497_v40  ;;  %v2515_v11 = vld [vmem:[#allocation2 + $0x13c] ss:$12 sps:$4 sm:$0xff]   ;;  %v2513_v12 = vld [vmem:[#allocation2 + $0x138] ss:$12 sps:$4 sm:$0xff]   ;;  %v2517_v13 = vld [vmem:[#allocation2 + $0x80] ss:$12 sps:$4 sm:$0xff]  }
  0x28   :  { %1984 = vmatmul.mubr.msk.bf16.gmra.mrb[4].mxu0 %vm144_vm1, %v70_v23  ;;  %2119 = vmatprep.subr.bf16.mxu1 %v2501_v43  ;;  %v2520_v14 = vld [vmem:[#allocation2 + $0x154] ss:$12 sps:$4 sm:$0xff]   ;;  %v2521_v15 = vld [vmem:[#allocation2 + $0x158] ss:$12 sps:$4 sm:$0xff]   ;;  %v2518_v16 = vld [vmem:[#allocation2 + $0x150] ss:$12 sps:$4 sm:$0xff]  }
  0x29   :  { %231 = vmatprep.mubr.bf16.mxu0 %v2577_v0  ;;  %848 = vmatpush1.bf16.msra.mxu0 %v2470_v26  ;;  %v2522_v17 = vld [vmem:[#allocation2 + $0x98] ss:$12 sps:$4 sm:$0xff]   ;;  %v2526_v19 = vld [vmem:[#allocation2 + $0x170] ss:$12 sps:$4 sm:$0xff]   ;;  %v2523_v20 = vld [vmem:[#allocation2 + $0x168] ss:$12 sps:$4 sm:$0xff]  }
  0x2a   :  { %849 = vmatprep.subr.bf16.mxu0 %v2475_v28  ;;  %2291 = vmatmul.mubr.msk.bf16.gmra.mrb[4].mxu1 %vm144_vm1, %v72_v39  ;;  %v2525_v18 = vld [vmem:[#allocation2 + $0x16c] ss:$12 sps:$4 sm:$0xff]   ;;  %v2527_v21 = vld [vmem:[#allocation2 + $0xb0] ss:$12 sps:$4 sm:$0xff]   ;;  %v525_v22 = vld [vmem:[#allocation2 + $0x180] sm:$0x33] }
  0x2b   :  { %2294 = vmatprep.mubr.msk.bf16.mxu1 %vm144_vm1, %v73_v41  ;;  %2120 = vmatpush3.bf16.msra.mxu1 %v2502_v50  ;;  %v2048_v23 = vcombine.high %v525_v22, %v525_v22  ;;  %v2530_v24 = vld [vmem:[#allocation2 + $0x188] ss:$0 sps:$4 sm:$0x33]   ;;  %v2755_v26 = vshrl.u32 %v89_v25, 7  ;;  %v87_v28 = vld [vmem:[%s3125_s2] sm:$0x7]  ;;  %v2047_v43 = vcombine.low %v525_v22, %v525_v22 }
  0x2c   :  { %2121 = vmatprep.subr.bf16.mxu1 %v2506_v51 }
  0x2d   :  { %850 = vmatpush1.bf16.msra.mxu0 %v2473_v29  ;;  %v95_v29 = vsub.s32 1, %v2755_v26  ;;  %v99_v35 = vsub.s32 2, %v2755_v26 }
  0x2e   :  { %851 = vmatprep.subr.bf16.mxu0 %v2478_v36 }
  0x2f   :  { %2122 = vmatpush3.bf16.msra.mxu1 %v2507_v55  ;;  %v2768_v31 = vrot.slane %v87_v28, %v95_v29  ;;  %v2777_v44 = vrot.slane %v87_v28, %v99_v35 }
  0x30   :  { %1985 = vmatmul.mubr.msk.bf16.gmra.mrb[8].mxu0 %vm144_vm1, %v71_v27  ;;  %2123 = vmatprep.subr.bf16.mxu1 %v2511_v57  ;;  %v91_v27 = vsub.s32 0, %v2755_v26 }
  0x31   :  { %241 = vmatprep.mubr.bf16.mxu0 %v2577_v0  ;;  %852 = vmatpush1.bf16.msra.mxu0 %v2476_v37 }
  0x32   :  { %853 = vmatprep.subr.bf16.mxu0 %v2481_v42  ;;  %2295 = vmatmul.mubr.msk.bf16.gmra.mrb[8].mxu1 %vm144_vm1, %v74_v54  ;;  %v2764_v30 = vrot.slane %v87_v28, %v91_v27 }
  0x33   :  { %2298 = vmatprep.mubr.msk.bf16.mxu1 %vm144_vm1, %v75_v56  ;;  %2124 = vmatpush3.bf16.msra.mxu1 %v2512_v62 }
  0x34   :  { %2125 = vmatprep.subr.bf16.mxu1 %v2516_v63 }
  0x35   :  { %854 = vmatpush1.bf16.msra.mxu0 %v2479_v46 }
  0x36   :  { %855 = vmatprep.subr.bf16.mxu0 %v2484_v49 }
  0x37   :  { %2126 = vmatpush3.bf16.msra.mxu1 %v2517_v13 }
  0x38   :  { %1986 = vmatmul.mubr.msk.bf16.gmra.mrb[12].mxu0 %vm144_vm1, %v72_v39  ;;  %2127 = vmatprep.subr.bf16.mxu1 %v2521_v15 }
  0x39   :  { %251 = vmatprep.mubr.bf16.mxu0 %v2577_v0  ;;  %856 = vmatpush1.bf16.msra.mxu0 %v2482_v52 }
  0x3a   :  { %857 = vmatprep.subr.bf16.mxu0 %v2487_v53  ;;  %2299 = vmatmul.mubr.msk.bf16.gmra.mrb[12].mxu1 %vm144_vm1, %v76_v3  ;;  %v835_v53 = vsel %vm833_vm2, %v2047_v43, 0 }
  0x3b   :  { %2128 = vmatpush3.bf16.msra.mxu1 %v2522_v17 }
  0x3c   :  { %2129 = vmatprep.subr.bf16.mxu1 %v2526_v19 }
  0x3d   :  { %858 = vmatpush1.bf16.msra.mxu0 %v2485_v60 }
  0x3e   :  { %859 = vmatprep.subr.bf16.mxu0 %v2490_v61 }
  0x3f   :  { %2130 = vmatpush3.bf16.msra.mxu1 %v2527_v21 }
  0x40   :  { %1987 = vmatmul.mubr.msk.bf16.gmra.mrb[16].mxu0 %vm144_vm1, %v73_v41  ;;  %2443 = vmatprep.subr.msk.bf16.mxu1 %vm833_vm2, %v2530_v24 }
  0x41   :  { %261 = vmatprep.mubr.bf16.mxu0 %v2577_v0  ;;  %860 = vmatpush1.bf16.msra.mxu0 %v2488_v1 }
  0x42   :  { %861 = vmatprep.subr.bf16.mxu0 %v2495_v2 }
  0x45   :  { %862 = vmatpush1.bf16.msra.mxu0 %v2493_v4 }
  0x46   :  { %863 = vmatprep.subr.bf16.mxu0 %v2500_v5 }
  0x48   :  { %1988 = vmatmul.mubr.msk.bf16.gmra.mrb[20].mxu0 %vm144_vm1, %v74_v54  ;;  %v841_v54 = vsel %vm833_vm2, %v2530_v24, 0 }
  0x49   :  { %271 = vmatprep.mubr.bf16.mxu0 %v2577_v0  ;;  %864 = vmatpush1.bf16.msra.mxu0 %v2498_v6 }
  0x4a   :  { %865 = vmatprep.subr.bf16.mxu0 %v2505_v7 }
  0x4d   :  { %866 = vmatpush1.bf16.msra.mxu0 %v2503_v8 }
  0x4e   :  { %867 = vmatprep.subr.bf16.mxu0 %v2510_v9 }
  0x50   :  { %1989 = vmatmul.mubr.msk.bf16.gmra.mrb[24].mxu0 %vm144_vm1, %v75_v56 }
  0x51   :  { %281 = vmatprep.mubr.bf16.mxu0 %v2577_v0  ;;  %868 = vmatpush1.bf16.msra.mxu0 %v2508_v10 }
  0x52   :  { %869 = vmatprep.subr.bf16.mxu0 %v2515_v11 }
  0x55   :  { %870 = vmatpush1.bf16.msra.mxu0 %v2513_v12 }
  0x56   :  { %871 = vmatprep.subr.bf16.mxu0 %v2520_v14 }
  0x58   :  { %1990 = vmatmul.mubr.msk.bf16.gmra.mrb[28].mxu0 %vm144_vm1, %v76_v3 }
  0x59   :  { %872 = vmatpush1.bf16.msra.mxu0 %v2518_v16 }
  0x5a   :  { %873 = vmatprep.subr.bf16.mxu0 %v2525_v18 }
  0x5d   :  { %874 = vmatpush1.bf16.msra.mxu0 %v2523_v20 }
  0x5e   :  { %2050 = vmatprep.subr.msk.bf16.mxu0 %vm833_vm2, %v2048_v23 }
  0xf3   :  { %v213_v32 = vpop.f32.mrb[0].mxu0 }
  0xf4   :  { %v214_v33 = vadd.f32 %v213_v32, %v2764_v30  ;;  %v215_v34 = vpop.f32.mrb[1].mxu0 }
  0xf5   :  { %v216_v36 = vadd.f32 %v215_v34, %v2768_v31  ;;  %v217_v37 = vpop.f32.mrb[2].mxu0  ;;  %v2288_v50 = vpop.f32.mrb[0].mxu1 }
  0xf6   :  { %v218_v38 = vadd.f32 %v217_v37, %v2764_v30  ;;  %v219_v39 = vpop.f32.mrb[3].mxu0  ;;  %v389_v41 = vmax.f32 %v214_v33, 0.0  ;;  %v335_v55 = vadd.f32 %v2288_v50, %v2777_v44  ;;  %v326_v56 = vpop.f32.mrb[1].mxu1 }
  0xf7   :  { %v220_v40 = vadd.f32 %v219_v39, %v2768_v31  ;;  %v390_v45 = vmax.f32 %v216_v36, 0.0  ;;  %v327_v59 = vadd.f32 %v326_v56, %v2777_v44  ;;  %v2289_v60 = vpop.f32.mrb[2].mxu1 }
  0xf8   :  { %v392_v42 = vmax.f32 %v218_v38, 0.0  ;;  %v397_v63 = vmax.f32 %v335_v55, 0.0  ;;  %v338_v1 = vadd.f32 %v2289_v60, %v2777_v44  ;;  %v329_v2 = vpop.f32.mrb[3].mxu1 }
  0xf9   :  { %v393_v46 = vmax.f32 %v220_v40, 0.0  ;;  %v391_v4 = vmax.f32 %v327_v59, 0.0  ;;  %v330_v5 = vadd.f32 %v329_v2, %v2777_v44 }
  0xfa   :  { %v437_v47 = vpack.c.bf16 %v392_v42, %v389_v41  ;;  %v400_v8 = vmax.f32 %v338_v1, 0.0 }
  0xfb   :  { %v438_v48 = vpack.c.bf16 %v393_v46, %v390_v45  ;;  %v223_v49 = vpop.f32.mrb[4].mxu0  ;;  %v394_v11 = vmax.f32 %v330_v5, 0.0 }
  0xfc   :  { %v224_v51 = vadd.f32 %v223_v49, %v2764_v30  ;;  %v225_v52 = vpop.f32.mrb[5].mxu0  ;;  %v2789_v13 = vpack.c.bf16 %v400_v8, %v397_v63 }
  0xfd   :  { %v226_v57 = vadd.f32 %v225_v52, %v2768_v31  ;;  %v227_v58 = vpop.f32.mrb[6].mxu0  ;;  %875 = vmatprep.mubr.bf16.mxu0 %v438_v48  ;;  %1101 = vmatprep.mubr.bf16.mxu1 %v438_v48  ;;  %v2791_v16 = vpack.c.bf16 %v394_v11, %v391_v4  ;;  %v2292_v17 = vpop.f32.mrb[4].mxu1 }
  0xfe   :  { %v228_v61 = vadd.f32 %v227_v58, %v2764_v30  ;;  %v229_v62 = vpop.f32.mrb[7].mxu0  ;;  %876 = vmatmul.mubr.bf16.vlgmr.msra.gmra.mrb[32].mxu0 %v437_v47  ;;  %1102 = vmatmul.mubr.bf16.vlgmr.msra.gmra.mrb[16].mxu1 %v437_v47  ;;  %v395_v6 = vmax.f32 %v224_v51, 0.0  ;;  %v351_v20 = vadd.f32 %v2292_v17, %v2777_v44  ;;  %v342_v21 = vpop.f32.mrb[5].mxu1 }
  0xff   :  { %v230_v3 = vadd.f32 %v229_v62, %v2768_v31  ;;  %957 = vmatpush1.bf16.msra.mxu0 %v835_v53  ;;  %2303 = vmatpush3.bf16.msra.mxu1 %v841_v54  ;;  %v396_v9 = vmax.f32 %v226_v57, 0.0  ;;  %v343_v24 = vadd.f32 %v342_v21, %v2777_v44  ;;  %v2293_v25 = vpop.f32.mrb[6].mxu1 }
 0x100   :  { %v398_v7 = vmax.f32 %v228_v61, 0.0  ;;  %v409_v33 = vmax.f32 %v351_v20, 0.0  ;;  %v354_v34 = vadd.f32 %v2293_v25, %v2777_v44  ;;  %v345_v36 = vpop.f32.mrb[7].mxu1 }
 0x101   :  { %v399_v10 = vmax.f32 %v230_v3, 0.0  ;;  %v403_v38 = vmax.f32 %v343_v24, 0.0  ;;  %v346_v39 = vadd.f32 %v345_v36, %v2777_v44 }
 0x102   :  { %v440_v12 = vpack.c.bf16 %v398_v7, %v395_v6  ;;  %v412_v42 = vmax.f32 %v354_v34, 0.0 }
 0x103   :  { %v441_v14 = vpack.c.bf16 %v399_v10, %v396_v9  ;;  %v233_v15 = vpop.f32.mrb[8].mxu0  ;;  %v406_v46 = vmax.f32 %v346_v39, 0.0 }
 0x104   :  { %v234_v18 = vadd.f32 %v233_v15, %v2764_v30  ;;  %v235_v19 = vpop.f32.mrb[9].mxu0  ;;  %v2801_v48 = vpack.c.bf16 %v412_v42, %v409_v33 }
 0x105   :  { %v236_v22 = vadd.f32 %v235_v19, %v2768_v31  ;;  %v237_v23 = vpop.f32.mrb[10].mxu0  ;;  %885 = vmatprep.mubr.bf16.mxu0 %v441_v14  ;;  %1109 = vmatprep.mubr.bf16.mxu1 %v441_v14  ;;  %v2803_v51 = vpack.c.bf16 %v406_v46, %v403_v38  ;;  %v2296_v52 = vpop.f32.mrb[8].mxu1 }
 0x106   :  { %v238_v28 = vadd.f32 %v237_v23, %v2764_v30  ;;  %v239_v32 = vpop.f32.mrb[11].mxu0  ;;  %886 = vmatmul.mubr.bf16.gmra.mrb[36].mxu0 %v440_v12  ;;  %1110 = vmatmul.mubr.bf16.gmra.mrb[20].mxu1 %v440_v12  ;;  %v401_v40 = vmax.f32 %v234_v18, 0.0  ;;  %v367_v55 = vadd.f32 %v2296_v52, %v2777_v44  ;;  %v358_v56 = vpop.f32.mrb[9].mxu1 }
 0x107   :  { %v240_v37 = vadd.f32 %v239_v32, %v2768_v31  ;;  %v402_v43 = vmax.f32 %v236_v22, 0.0  ;;  %v359_v59 = vadd.f32 %v358_v56, %v2777_v44  ;;  %v2297_v60 = vpop.f32.mrb[10].mxu1 }
 0x108   :  { %v404_v41 = vmax.f32 %v238_v28, 0.0  ;;  %v421_v63 = vmax.f32 %v367_v55, 0.0  ;;  %v370_v1 = vadd.f32 %v2297_v60, %v2777_v44  ;;  %v361_v2 = vpop.f32.mrb[11].mxu1 }
 0x109   :  { %v405_v45 = vmax.f32 %v240_v37, 0.0  ;;  %v415_v4 = vmax.f32 %v359_v59, 0.0  ;;  %v362_v5 = vadd.f32 %v361_v2, %v2777_v44 }
 0x10a   :  { %v443_v47 = vpack.c.bf16 %v404_v41, %v401_v40  ;;  %v424_v8 = vmax.f32 %v370_v1, 0.0 }
 0x10b   :  { %v444_v49 = vpack.c.bf16 %v405_v45, %v402_v43  ;;  %v243_v50 = vpop.f32.mrb[12].mxu0  ;;  %v418_v11 = vmax.f32 %v362_v5, 0.0 }
 0x10c   :  { %v244_v53 = vadd.f32 %v243_v50, %v2764_v30  ;;  %v245_v54 = vpop.f32.mrb[13].mxu0  ;;  %v2813_v14 = vpack.c.bf16 %v424_v8, %v421_v63 }
 0x10d   :  { %v246_v57 = vadd.f32 %v245_v54, %v2768_v31  ;;  %v247_v58 = vpop.f32.mrb[14].mxu0  ;;  %895 = vmatprep.mubr.bf16.mxu0 %v444_v49  ;;  %1117 = vmatprep.mubr.bf16.mxu1 %v444_v49  ;;  %v2815_v18 = vpack.c.bf16 %v418_v11, %v415_v4  ;;  %v2300_v19 = vpop.f32.mrb[12].mxu1 }
 0x10e   :  { %v248_v61 = vadd.f32 %v247_v58, %v2764_v30  ;;  %v249_v62 = vpop.f32.mrb[15].mxu0  ;;  %896 = vmatmul.mubr.bf16.gmra.mrb[40].mxu0 %v443_v47  ;;  %1118 = vmatmul.mubr.bf16.gmra.mrb[24].mxu1 %v443_v47  ;;  %v407_v6 = vmax.f32 %v244_v53, 0.0  ;;  %v383_v22 = vadd.f32 %v2300_v19, %v2777_v44  ;;  %v374_v23 = vpop.f32.mrb[13].mxu1 }
 0x10f   :  { %v250_v3 = vadd.f32 %v249_v62, %v2768_v31  ;;  %v408_v9 = vmax.f32 %v246_v57, 0.0  ;;  %v375_v28 = vadd.f32 %v374_v23, %v2777_v44  ;;  %v2301_v32 = vpop.f32.mrb[14].mxu1 }
 0x110   :  { %v410_v7 = vmax.f32 %v248_v61, 0.0  ;;  %v433_v36 = vmax.f32 %v383_v22, 0.0  ;;  %v386_v37 = vadd.f32 %v2301_v32, %v2777_v44  ;;  %v377_v38 = vpop.f32.mrb[15].mxu1 }
 0x111   :  { %v411_v10 = vmax.f32 %v250_v3, 0.0  ;;  %v427_v40 = vmax.f32 %v375_v28, 0.0  ;;  %v378_v41 = vadd.f32 %v377_v38, %v2777_v44 }
 0x112   :  { %v446_v12 = vpack.c.bf16 %v410_v7, %v407_v6  ;;  %v436_v45 = vmax.f32 %v386_v37, 0.0 }
 0x113   :  { %v447_v15 = vpack.c.bf16 %v411_v10, %v408_v9  ;;  %v253_v17 = vpop.f32.mrb[16].mxu0  ;;  %v430_v49 = vmax.f32 %v378_v41, 0.0 }
 0x114   :  { %v254_v20 = vadd.f32 %v253_v17, %v2764_v30  ;;  %v255_v21 = vpop.f32.mrb[17].mxu0  ;;  %v2825_v52 = vpack.c.bf16 %v436_v45, %v433_v36  ;;  %v2539_v45 = vld [vmem:[%s3128_s5 + $0x18] sm:$0xff]  }
 0x115   :  { %v256_v24 = vadd.f32 %v255_v21, %v2768_v31  ;;  %v257_v25 = vpop.f32.mrb[18].mxu0  ;;  %905 = vmatprep.mubr.bf16.mxu0 %v447_v15  ;;  %1125 = vmatprep.mubr.bf16.mxu1 %v447_v15  ;;  %v2827_v55 = vpack.c.bf16 %v430_v49, %v427_v40  ;;  %v2542_v49 = vld [vmem:[%s3128_s5 + $0x68] sm:$0xff]  }
 0x116   :  { %v258_v33 = vadd.f32 %v257_v25, %v2764_v30  ;;  %v259_v34 = vpop.f32.mrb[19].mxu0  ;;  %906 = vmatmul.mubr.bf16.gmra.mrb[44].mxu0 %v446_v12  ;;  %1126 = vmatmul.mubr.bf16.gmra.mrb[28].mxu1 %v446_v12  ;;  %v413_v42 = vmax.f32 %v254_v20, 0.0 }
 0x117   :  { %v260_v39 = vadd.f32 %v259_v34, %v2768_v31  ;;  %v414_v46 = vmax.f32 %v256_v24, 0.0 }
 0x118   :  { %v416_v43 = vmax.f32 %v258_v33, 0.0 }
 0x119   :  { %v417_v47 = vmax.f32 %v260_v39, 0.0 }
 0x11a   :  { %v449_v50 = vpack.c.bf16 %v416_v43, %v413_v42  ;;  %v2538_v43 = vld [vmem:[%s3128_s5 + $0x58] sm:$0xff]  }
 0x11b   :  { %v450_v53 = vpack.c.bf16 %v417_v47, %v414_v46  ;;  %v263_v54 = vpop.f32.mrb[20].mxu0  ;;  %v2540_v46 = vld [vmem:[%s3128_s5 + $0x60] sm:$0xff]  }
 0x11c   :  { %v264_v56 = vadd.f32 %v263_v54, %v2764_v30  ;;  %v265_v57 = vpop.f32.mrb[21].mxu0  ;;  %v2541_v47 = vld [vmem:[%s3128_s5 + $0x20] sm:$0xff]   ;;  %v2546_v54 = vld [vmem:[%s3128_s5 + $0x78] sm:$0xff]  }
 0x11d   :  { %v266_v58 = vadd.f32 %v265_v57, %v2768_v31  ;;  %v267_v59 = vpop.f32.mrb[22].mxu0  ;;  %915 = vmatprep.mubr.bf16.mxu0 %v450_v53  ;;  %1133 = vmatprep.mubr.bf16.mxu1 %v450_v53  ;;  %v2545_v53 = vld [vmem:[%s3128_s5 + $0x30] sm:$0xff]  }
 0x11e   :  { %v268_v44 = vadd.f32 %v267_v59, %v2764_v30  ;;  %v269_v60 = vpop.f32.mrb[23].mxu0  ;;  %916 = vmatmul.mubr.bf16.gmra.mrb[48].mxu0 %v449_v50  ;;  %1134 = vmatmul.mubr.bf16.gmra.mrb[32].mxu1 %v449_v50  ;;  %v419_v62 = vmax.f32 %v264_v56, 0.0  ;;  %v2543_v50 = vld [vmem:[%s3128_s5 + $0x28] sm:$0xff]  }
 0x11f   :  { %v270_v61 = vadd.f32 %v269_v60, %v2768_v31  ;;  %v420_v1 = vmax.f32 %v266_v58, 0.0  ;;  %v2937_v60 = vld [vmem:[%s3130_s7] sm:$0xff]  }
 0x120   :  { %v422_v63 = vmax.f32 %v268_v44, 0.0 }
 0x121   :  { %v423_v2 = vmax.f32 %v270_v61, 0.0 }
 0x122   :  { %v452_v3 = vpack.c.bf16 %v422_v63, %v419_v62 }
 0x123   :  { %v453_v4 = vpack.c.bf16 %v423_v2, %v420_v1  ;;  %v273_v5 = vpop.f32.mrb[24].mxu0 }
 0x124   :  { %v274_v6 = vadd.f32 %v273_v5, %v2764_v30  ;;  %v275_v7 = vpop.f32.mrb[25].mxu0 }
 0x125   :  { %v276_v8 = vadd.f32 %v275_v7, %v2768_v31  ;;  %v277_v9 = vpop.f32.mrb[26].mxu0  ;;  %925 = vmatprep.mubr.bf16.mxu0 %v453_v4  ;;  %1141 = vmatprep.mubr.bf16.mxu1 %v453_v4 }
 0x126   :  { %v278_v10 = vadd.f32 %v277_v9, %v2764_v30  ;;  %v279_v11 = vpop.f32.mrb[27].mxu0  ;;  %926 = vmatmul.mubr.bf16.gmra.mrb[52].mxu0 %v452_v3  ;;  %1142 = vmatmul.mubr.bf16.gmra.mrb[36].mxu1 %v452_v3  ;;  %v425_v15 = vmax.f32 %v274_v6, 0.0 }
 0x127   :  { %v280_v12 = vadd.f32 %v279_v11, %v2768_v31  ;;  %v426_v19 = vmax.f32 %v276_v8, 0.0 }
 0x128   :  { %v428_v17 = vmax.f32 %v278_v10, 0.0 }
 0x129   :  { %v429_v20 = vmax.f32 %v280_v12, 0.0 }
 0x12a   :  { %v455_v21 = vpack.c.bf16 %v428_v17, %v425_v15 }
 0x12b   :  { %v456_v22 = vpack.c.bf16 %v429_v20, %v426_v19  ;;  %v283_v23 = vpop.f32.mrb[28].mxu0 }
 0x12c   :  { %v284_v24 = vadd.f32 %v283_v23, %v2764_v30  ;;  %v285_v25 = vpop.f32.mrb[29].mxu0 }
 0x12d   :  { %v286_v28 = vadd.f32 %v285_v25, %v2768_v31  ;;  %v287_v32 = vpop.f32.mrb[30].mxu0  ;;  %935 = vmatprep.mubr.bf16.mxu0 %v456_v22  ;;  %1149 = vmatprep.mubr.bf16.mxu1 %v456_v22 }
 0x12e   :  { %v288_v33 = vadd.f32 %v287_v32, %v2764_v30  ;;  %v289_v34 = vpop.f32.mrb[31].mxu0  ;;  %936 = vmatmul.mubr.bf16.gmra.mrb[56].mxu0 %v455_v21  ;;  %1150 = vmatmul.mubr.bf16.gmra.mrb[40].mxu1 %v455_v21  ;;  %v431_v37 = vmax.f32 %v284_v24, 0.0  ;;  %v2531_v30 = vld [vmem:[%s3128_s5 + $0x80] ss:$0 sps:$4 sm:$0x33]  }
 0x12f   :  { %v290_v36 = vadd.f32 %v289_v34, %v2768_v31  ;;  %v432_v39 = vmax.f32 %v286_v28, 0.0  ;;  %2444 = vmatprep.subr.msk.bf16.mxu0 %vm833_vm2, %v2531_v30  ;;  %v1499_v31 = vsel %vm833_vm2, %v2531_v30, 0 }
 0x130   :  { %v434_v38 = vmax.f32 %v288_v33, 0.0 }
 0x131   :  { %v435_v40 = vmax.f32 %v290_v36, 0.0 }
 0x132   :  { %v458_v41 = vpack.c.bf16 %v434_v38, %v431_v37 }
 0x133   :  { %v459_v42 = vpack.c.bf16 %v435_v40, %v432_v39 }
 0x135   :  { %945 = vmatprep.mubr.bf16.mxu0 %v459_v42  ;;  %1157 = vmatprep.mubr.bf16.mxu1 %v459_v42 }
 0x136   :  { %946 = vmatmul.mubr.bf16.gmra.mrb[60].mxu0 %v458_v41  ;;  %1158 = vmatmul.mubr.bf16.gmra.mrb[44].mxu1 %v458_v41 }
 0x137   :  { %2304 = vmatprep.mubr.msk.bf16.mxu1 %vm808_vm3, %v2791_v16  ;;  %988 = vmatprep.mubr.bf16.mxu0 %v2577_v0 }
 0x13e   :  { %2051 = vmatmul.mubr.msk.bf16.vlgmr.msra.gmra.mrb[32].mxu0 %vm808_vm3, %v2791_v16  ;;  %2305 = vmatmul.mubr.msk.bf16.vlgmr.msra.gmra.mrb[48].mxu1 %vm808_vm3, %v2789_v13  ;;  %v2533_v16 = vld [vmem:[%s3128_s5] sm:$0xff]  }
 0x13f   :  { %998 = vmatprep.mubr.bf16.mxu0 %v2577_v0  ;;  %2308 = vmatprep.mubr.msk.bf16.mxu1 %vm808_vm3, %v2803_v51 }
 0x140   :  { %2321 = vmatpush3.bf16.msra.mxu0 %v1499_v31 }
 0x146   :  { %2052 = vmatmul.mubr.msk.bf16.gmra.mrb[36].mxu0 %vm808_vm3, %v2789_v13  ;;  %2309 = vmatmul.mubr.msk.bf16.gmra.mrb[52].mxu1 %vm808_vm3, %v2801_v48  ;;  %v2532_v13 = vld [vmem:[%s3128_s5 + $0x40] sm:$0xff]  }
 0x147   :  { %1008 = vmatprep.mubr.bf16.mxu0 %v2577_v0  ;;  %2312 = vmatprep.mubr.msk.bf16.mxu1 %vm808_vm3, %v2815_v18 }
 0x148   :  { %2188 = vmatprep.subr.bf16.mxu1 %v2532_v13 }
 0x149   :  { %2189 = vmatpush3.bf16.msra.mxu1 %v2533_v16 }
 0x14e   :  { %2053 = vmatmul.mubr.msk.bf16.gmra.mrb[40].mxu0 %vm808_vm3, %v2803_v51  ;;  %2313 = vmatmul.mubr.msk.bf16.gmra.mrb[56].mxu1 %vm808_vm3, %v2813_v14  ;;  %v2535_v51 = vld [vmem:[%s3128_s5 + $0x8] sm:$0xff]  }
 0x14f   :  { %1018 = vmatprep.mubr.bf16.mxu0 %v2577_v0  ;;  %2316 = vmatprep.mubr.msk.bf16.mxu1 %vm808_vm3, %v2827_v55 }
 0x156   :  { %2054 = vmatmul.mubr.msk.bf16.gmra.mrb[44].mxu0 %vm808_vm3, %v2801_v48  ;;  %2317 = vmatmul.mubr.msk.bf16.gmra.mrb[60].mxu1 %vm808_vm3, %v2825_v52  ;;  %v2534_v48 = vld [vmem:[%s3128_s5 + $0x48] sm:$0xff]  }
 0x157   :  { %1028 = vmatprep.mubr.bf16.mxu0 %v2577_v0  ;;  %2190 = vmatprep.subr.bf16.mxu1 %v2534_v48  ;;  %v527_v48 = vld [vmem:[%s3127_s4] sm:$0x7] }
 0x158   :  { %2191 = vmatpush3.bf16.msra.mxu1 %v2535_v51 }
 0x15e   :  { %2055 = vmatmul.mubr.msk.bf16.gmra.mrb[48].mxu0 %vm808_vm3, %v2815_v18  ;;  %v2537_v18 = vld [vmem:[%s3128_s5 + $0x10] sm:$0xff]  }
 0x15f   :  { %1038 = vmatprep.mubr.bf16.mxu0 %v2577_v0 }
 0x166   :  { %2056 = vmatmul.mubr.msk.bf16.gmra.mrb[52].mxu0 %vm808_vm3, %v2813_v14  ;;  %v2536_v14 = vld [vmem:[%s3128_s5 + $0x50] sm:$0xff]  }
 0x167   :  { %1048 = vmatprep.mubr.bf16.mxu0 %v2577_v0  ;;  %2192 = vmatprep.subr.bf16.mxu1 %v2536_v14 }
 0x168   :  { %2193 = vmatpush3.bf16.msra.mxu1 %v2537_v18 }
 0x169   :  { %2194 = vmatprep.subr.bf16.mxu1 %v2538_v43 }
 0x16c   :  { %2195 = vmatpush3.bf16.msra.mxu1 %v2539_v45  ;;  %v2967_v45 = vrot.slane %v527_v48, %v99_v35 }
 0x16d   :  { %2196 = vmatprep.subr.bf16.mxu1 %v2540_v46  ;;  %v2971_v46 = vrot.slane %v527_v48, %v91_v27 }
 0x16e   :  { %2057 = vmatmul.mubr.msk.bf16.gmra.mrb[56].mxu0 %vm808_vm3, %v2827_v55  ;;  %v2547_v55 = vld [vmem:[%s3128_s5 + $0x38] sm:$0xff]  }
 0x16f   :  { %1058 = vmatprep.mubr.bf16.mxu0 %v2577_v0 }
 0x170   :  { %2197 = vmatpush3.bf16.msra.mxu1 %v2541_v47  ;;  %v2975_v47 = vrot.slane %v527_v48, %v95_v29 }
 0x171   :  { %2198 = vmatprep.subr.bf16.mxu1 %v2542_v49 }
 0x174   :  { %2199 = vmatpush3.bf16.msra.mxu1 %v2543_v50 }
 0x176   :  { %2058 = vmatmul.mubr.msk.bf16.gmra.mrb[60].mxu0 %vm808_vm3, %v2825_v52  ;;  %v2544_v52 = vld [vmem:[%s3128_s5 + $0x70] sm:$0xff]  }
 0x177   :  { %2200 = vmatprep.subr.bf16.mxu1 %v2544_v52 }
 0x178   :  { %2201 = vmatpush3.bf16.msra.mxu1 %v2545_v53 }
 0x179   :  { %2202 = vmatprep.subr.bf16.mxu1 %v2546_v54 }
 0x17c   :  { %2203 = vmatpush3.bf16.msra.mxu1 %v2547_v55 }
 0x17d   :  { %2338 = vmatprep.subr.bf16.mxu1 %v2937_v60 }
 0x1d1   :  { %v2131_v56 = vpop.f32.mrb[16].mxu1 }
 0x1d2   :  { %v2132_v57 = vpop.f32.mrb[17].mxu1 }
 0x1d3   :  { %v2133_v58 = vadd.f32 %v2132_v57, %v2131_v56  ;;  %v2134_v59 = vpop.f32.mrb[18].mxu1 }
 0x1d4   :  { %v2135_v44 = vpop.f32.mrb[19].mxu1 }
 0x1d5   :  { %v2136_v61 = vadd.f32 %v2135_v44, %v2134_v59  ;;  %v1104_v53 = vadd.f32 %v2133_v58, %v2967_v45 }
 0x1d7   :  { %v1107_v29 = vadd.f32 %v2136_v61, %v2967_v45 }
 0x1d9   :  { %v2137_v62 = vpop.f32.mrb[20].mxu1 }
 0x1da   :  { %v2138_v63 = vpop.f32.mrb[21].mxu1 }
 0x1db   :  { %v2139_v1 = vadd.f32 %v2138_v63, %v2137_v62  ;;  %v2140_v2 = vpop.f32.mrb[22].mxu1 }
 0x1dc   :  { %v2141_v3 = vpop.f32.mrb[23].mxu1 }
 0x1dd   :  { %v2142_v4 = vadd.f32 %v2141_v3, %v2140_v2  ;;  %v1112_v49 = vadd.f32 %v2139_v1, %v2967_v45 }
 0x1df   :  { %v1115_v57 = vadd.f32 %v2142_v4, %v2967_v45 }
 0x1e1   :  { %v2143_v5 = vpop.f32.mrb[24].mxu1 }
 0x1e2   :  { %v2144_v6 = vpop.f32.mrb[25].mxu1 }
 0x1e3   :  { %v2940_v7 = vadd.f32 %v2144_v6, %v2143_v5  ;;  %v2146_v8 = vpop.f32.mrb[26].mxu1 }
 0x1e4   :  { %v2147_v9 = vpop.f32.mrb[27].mxu1 }
 0x1e5   :  { %v2942_v10 = vadd.f32 %v2147_v9, %v2146_v8 }
 0x1e9   :  { %v2149_v11 = vpop.f32.mrb[28].mxu1 }
 0x1ea   :  { %v2150_v12 = vpop.f32.mrb[29].mxu1 }
 0x1eb   :  { %v2151_v15 = vadd.f32 %v2150_v12, %v2149_v11  ;;  %v2152_v17 = vpop.f32.mrb[30].mxu1 }
 0x1ec   :  { %v2153_v19 = vpop.f32.mrb[31].mxu1 }
 0x1ed   :  { %v2944_v20 = vadd.f32 %v2153_v19, %v2152_v17  ;;  %v1128_v61 = vadd.f32 %v2151_v15, %v2967_v45 }
 0x1f1   :  { %v2155_v21 = vpop.f32.mrb[32].mxu1 }
 0x1f2   :  { %v2156_v22 = vpop.f32.mrb[33].mxu1 }
 0x1f3   :  { %v2946_v23 = vadd.f32 %v2156_v22, %v2155_v21  ;;  %v2158_v24 = vpop.f32.mrb[34].mxu1 }
 0x1f4   :  { %v2159_v25 = vpop.f32.mrb[35].mxu1 }
 0x1f5   :  { %v2948_v28 = vadd.f32 %v2159_v25, %v2158_v24 }
 0x1f9   :  { %v2161_v32 = vpop.f32.mrb[36].mxu1 }
 0x1fa   :  { %v2162_v33 = vpop.f32.mrb[37].mxu1 }
 0x1fb   :  { %v2950_v34 = vadd.f32 %v2162_v33, %v2161_v32  ;;  %v2164_v36 = vpop.f32.mrb[38].mxu1  ;;  %v1120_v33 = vadd.f32 %v2940_v7, %v2967_v45  ;;  %v1123_v7 = vadd.f32 %v2942_v10, %v2967_v45 }
 0x1fc   :  { %v2165_v37 = vpop.f32.mrb[39].mxu1 }
 0x1fd   :  { %v2952_v38 = vadd.f32 %v2165_v37, %v2164_v36 }
 0x201   :  { %v2167_v39 = vpop.f32.mrb[40].mxu1 }
 0x202   :  { %v2168_v40 = vpop.f32.mrb[41].mxu1 }
 0x203   :  { %v2954_v41 = vadd.f32 %v2168_v40, %v2167_v39  ;;  %v2170_v42 = vpop.f32.mrb[42].mxu1 }
 0x204   :  { %v2171_v30 = vpop.f32.mrb[43].mxu1 }
 0x205   :  { %v2956_v31 = vadd.f32 %v2171_v30, %v2170_v42  ;;  %v1131_v42 = vadd.f32 %v2944_v20, %v2967_v45  ;;  %v2549_v30 = vld [vmem:[%s3130_s7 + $0x8] sm:$0xff]  }
 0x209   :  { %v2173_v13 = vpop.f32.mrb[44].mxu1 }
 0x20a   :  { %v2174_v16 = vpop.f32.mrb[45].mxu1 }
 0x20b   :  { %v2961_v51 = vadd.f32 %v2174_v16, %v2173_v13  ;;  %v2176_v14 = vpop.f32.mrb[46].mxu1 }
 0x20c   :  { %v2177_v18 = vpop.f32.mrb[47].mxu1 }
 0x20d   :  { %v2963_v43 = vadd.f32 %v2177_v18, %v2176_v14 }
 0x211   :  { %v990_v50 = vpop.f32.mrb[32].mxu0  ;;  %v2306_v52 = vpop.f32.mrb[48].mxu1 }
 0x212   :  { %v2378_v54 = vadd.f32 %v990_v50, %v2971_v46  ;;  %v1209_v55 = vadd.f32 %v2306_v52, %v1112_v49  ;;  %v992_v56 = vpop.f32.mrb[33].mxu0  ;;  %v1200_v35 = vpop.f32.mrb[49].mxu1 }
 0x213   :  { %v2379_v27 = vadd.f32 %v992_v56, %v2975_v47  ;;  %v1201_v59 = vadd.f32 %v1200_v35, %v1104_v53  ;;  %v994_v44 = vpop.f32.mrb[34].mxu0  ;;  %v2307_v26 = vpop.f32.mrb[50].mxu1 }
 0x214   :  { %v2380_v62 = vadd.f32 %v994_v44, %v2971_v46  ;;  %v1212_v63 = vadd.f32 %v2307_v26, %v1115_v57  ;;  %v996_v1 = vpop.f32.mrb[35].mxu0  ;;  %v1203_v2 = vpop.f32.mrb[51].mxu1  ;;  %v1263_v5 = vmax.f32 %v2378_v54, 0.0  ;;  %v1271_v6 = vmax.f32 %v1209_v55, 0.0 }
 0x215   :  { %v2381_v58 = vadd.f32 %v996_v1, %v2975_v47  ;;  %v1204_v3 = vadd.f32 %v1203_v2, %v1107_v29  ;;  %v1264_v4 = vmax.f32 %v2379_v27, 0.0  ;;  %v1265_v11 = vmax.f32 %v1201_v59, 0.0 }
 0x216   :  { %v1266_v8 = vmax.f32 %v2380_v62, 0.0  ;;  %v1274_v9 = vmax.f32 %v1212_v63, 0.0  ;;  %v1144_v26 = vadd.f32 %v2950_v34, %v2967_v45 }
 0x217   :  { %v1267_v12 = vmax.f32 %v2381_v58, 0.0  ;;  %v1268_v17 = vmax.f32 %v1204_v3, 0.0 }
 0x218   :  { %v1311_v19 = vpack.c.bf16 %v1266_v8, %v1263_v5  ;;  %v1316_v21 = vpack.c.bf16 %v1274_v9, %v1271_v6  ;;  %v1147_v6 = vadd.f32 %v2952_v38, %v2967_v45 }
 0x219   :  { %v1312_v22 = vpack.c.bf16 %v1267_v12, %v1264_v4  ;;  %v1313_v24 = vpack.c.bf16 %v1268_v17, %v1265_v11  ;;  %v1000_v25 = vpop.f32.mrb[36].mxu0  ;;  %v2310_v32 = vpop.f32.mrb[52].mxu1 }
 0x21a   :  { %v2382_v36 = vadd.f32 %v1000_v25, %v2971_v46  ;;  %v1225_v37 = vadd.f32 %v2310_v32, %v1128_v61  ;;  %v1002_v39 = vpop.f32.mrb[37].mxu0  ;;  %v1216_v40 = vpop.f32.mrb[53].mxu1 }
 0x21b   :  { %v2383_v15 = vadd.f32 %v1002_v39, %v2975_v47  ;;  %v1217_v13 = vadd.f32 %v1216_v40, %v1120_v33  ;;  %v1004_v16 = vpop.f32.mrb[38].mxu0  ;;  %v2311_v48 = vpop.f32.mrb[54].mxu1  ;;  %1533 = vmatprep.mubr.bf16.mxu1 %v1312_v22  ;;  %2322 = vmatprep.mubr.msk.bf16.mxu0 %vm808_vm3, %v1313_v24  ;;  %v1160_v40 = vadd.f32 %v2961_v51, %v2967_v45 }
 0x21c   :  { %v2384_v14 = vadd.f32 %v1004_v16, %v2971_v46  ;;  %v1228_v18 = vadd.f32 %v2311_v48, %v1131_v42  ;;  %v1006_v49 = vpop.f32.mrb[39].mxu0  ;;  %v1219_v20 = vpop.f32.mrb[55].mxu1  ;;  %1534 = vmatmul.mubr.bf16.vlgmr.msra.gmra.mrb[64].mxu1 %v1311_v19  ;;  %2323 = vmatmul.mubr.msk.bf16.vlgmr.msra.gmra.mrb[64].mxu0 %vm808_vm3, %v1316_v21  ;;  %v1269_v53 = vmax.f32 %v2382_v36, 0.0  ;;  %v1283_v54 = vmax.f32 %v1225_v37, 0.0 }
 0x21d   :  { %v2385_v50 = vadd.f32 %v1006_v49, %v2975_v47  ;;  %v1220_v52 = vadd.f32 %v1219_v20, %v1123_v7  ;;  %2339 = vmatpush3.bf16.msra.mxu1 %v2937_v60  ;;  %v1270_v35 = vmax.f32 %v2383_v15, 0.0  ;;  %v1277_v10 = vmax.f32 %v1217_v13, 0.0 }
 0x21e   :  { %v1272_v55 = vmax.f32 %v2384_v14, 0.0  ;;  %v1286_v56 = vmax.f32 %v1228_v18, 0.0  ;;  %2340 = vmatprep.subr.bf16.mxu1 %v2549_v30  ;;  %v1136_v60 = vadd.f32 %v2946_v23, %v2967_v45  ;;  %v1139_v23 = vadd.f32 %v2948_v28, %v2967_v45 }
 0x21f   :  { %v1273_v57 = vmax.f32 %v2385_v50, 0.0  ;;  %v1280_v27 = vmax.f32 %v1220_v52, 0.0  ;;  %v1152_v16 = vadd.f32 %v2954_v41, %v2967_v45  ;;  %v1163_v49 = vadd.f32 %v2963_v43, %v2967_v45 }
 0x220   :  { %v1314_v59 = vpack.c.bf16 %v1272_v55, %v1269_v53  ;;  %v1322_v44 = vpack.c.bf16 %v1286_v56, %v1283_v54  ;;  %v1155_v53 = vadd.f32 %v2956_v31, %v2967_v45 }
 0x221   :  { %v1315_v29 = vpack.c.bf16 %v1273_v57, %v1270_v35  ;;  %v1319_v62 = vpack.c.bf16 %v1280_v27, %v1277_v10  ;;  %v1010_v63 = vpop.f32.mrb[40].mxu0  ;;  %v2314_v1 = vpop.f32.mrb[56].mxu1  ;;  %2341 = vmatpush3.bf16.msra.mxu1 %v2549_v30 }
 0x222   :  { %v2386_v2 = vadd.f32 %v1010_v63, %v2971_v46  ;;  %v1241_v58 = vadd.f32 %v2314_v1, %v1144_v26  ;;  %v1012_v3 = vpop.f32.mrb[41].mxu0  ;;  %v1232_v5 = vpop.f32.mrb[57].mxu1 }
 0x223   :  { %v2387_v8 = vadd.f32 %v1012_v3, %v2975_v47  ;;  %v1233_v9 = vadd.f32 %v1232_v5, %v1136_v60  ;;  %v1014_v34 = vpop.f32.mrb[42].mxu0  ;;  %v2315_v4 = vpop.f32.mrb[58].mxu1  ;;  %1541 = vmatprep.mubr.bf16.mxu1 %v1315_v29  ;;  %2326 = vmatprep.mubr.msk.bf16.mxu0 %vm808_vm3, %v1319_v62 }
 0x224   :  { %v2388_v11 = vadd.f32 %v1014_v34, %v2971_v46  ;;  %v1244_v12 = vadd.f32 %v2315_v4, %v1147_v6  ;;  %v1016_v17 = vpop.f32.mrb[43].mxu0  ;;  %v1235_v19 = vpop.f32.mrb[59].mxu1  ;;  %1542 = vmatmul.mubr.bf16.gmra.mrb[68].mxu1 %v1314_v59  ;;  %2327 = vmatmul.mubr.msk.bf16.gmra.mrb[68].mxu0 %vm808_vm3, %v1322_v44  ;;  %v1275_v61 = vmax.f32 %v2386_v2, 0.0  ;;  %v1295_v22 = vmax.f32 %v1241_v58, 0.0 }
 0x225   :  { %v2389_v38 = vadd.f32 %v1016_v17, %v2975_v47  ;;  %v1236_v21 = vadd.f32 %v1235_v19, %v1139_v23  ;;  %v1276_v32 = vmax.f32 %v2387_v8, 0.0  ;;  %v1289_v33 = vmax.f32 %v1233_v9, 0.0 }
 0x226   :  { %v1278_v24 = vmax.f32 %v2388_v11, 0.0  ;;  %v1298_v25 = vmax.f32 %v1244_v12, 0.0 }
 0x227   :  { %v1279_v36 = vmax.f32 %v2389_v38, 0.0  ;;  %v1292_v37 = vmax.f32 %v1236_v21, 0.0 }
 0x228   :  { %v1317_v28 = vpack.c.bf16 %v1278_v24, %v1275_v61  ;;  %v1328_v39 = vpack.c.bf16 %v1298_v25, %v1295_v22 }
 0x229   :  { %v1318_v42 = vpack.c.bf16 %v1279_v36, %v1276_v32  ;;  %v1325_v30 = vpack.c.bf16 %v1292_v37, %v1289_v33  ;;  %v1020_v15 = vpop.f32.mrb[44].mxu0  ;;  %v2318_v13 = vpop.f32.mrb[60].mxu1 }
 0x22a   :  { %v2390_v48 = vadd.f32 %v1020_v15, %v2971_v46  ;;  %v1257_v7 = vadd.f32 %v2318_v13, %v1160_v40  ;;  %v1022_v14 = vpop.f32.mrb[45].mxu0  ;;  %v1248_v18 = vpop.f32.mrb[61].mxu1 }
 0x22b   :  { %v2391_v20 = vadd.f32 %v1022_v14, %v2975_v47  ;;  %v1249_v50 = vadd.f32 %v1248_v18, %v1152_v16  ;;  %v1024_v52 = vpop.f32.mrb[46].mxu0  ;;  %v2319_v51 = vpop.f32.mrb[62].mxu1  ;;  %1549 = vmatprep.mubr.bf16.mxu1 %v1318_v42  ;;  %2330 = vmatprep.mubr.msk.bf16.mxu0 %vm808_vm3, %v1325_v30 }
 0x22c   :  { %v2392_v41 = vadd.f32 %v1024_v52, %v2971_v46  ;;  %v1260_v54 = vadd.f32 %v2319_v51, %v1163_v49  ;;  %v1026_v55 = vpop.f32.mrb[47].mxu0  ;;  %v1251_v56 = vpop.f32.mrb[63].mxu1  ;;  %1550 = vmatmul.mubr.bf16.gmra.mrb[72].mxu1 %v1317_v28  ;;  %2331 = vmatmul.mubr.msk.bf16.gmra.mrb[72].mxu0 %vm808_vm3, %v1328_v39  ;;  %v1281_v10 = vmax.f32 %v2390_v48, 0.0  ;;  %v1307_v57 = vmax.f32 %v1257_v7, 0.0 }
 0x22d   :  { %v2393_v43 = vadd.f32 %v1026_v55, %v2975_v47  ;;  %v1252_v35 = vadd.f32 %v1251_v56, %v1155_v53  ;;  %v1282_v44 = vmax.f32 %v2391_v20, 0.0  ;;  %v1301_v26 = vmax.f32 %v1249_v50, 0.0 }
 0x22e   :  { %v1284_v27 = vmax.f32 %v2392_v41, 0.0  ;;  %v1310_v59 = vmax.f32 %v1260_v54, 0.0 }
 0x22f   :  { %v1285_v29 = vmax.f32 %v2393_v43, 0.0  ;;  %v1304_v62 = vmax.f32 %v1252_v35, 0.0 }
 0x230   :  { %v1320_v31 = vpack.c.bf16 %v1284_v27, %v1281_v10  ;;  %v1334_v45 = vpack.c.bf16 %v1310_v59, %v1307_v57 }
 0x231   :  { %v1321_v63 = vpack.c.bf16 %v1285_v29, %v1282_v44  ;;  %v1331_v1 = vpack.c.bf16 %v1304_v62, %v1301_v26  ;;  %v1030_v60 = vpop.f32.mrb[48].mxu0 }
 0x232   :  { %v2394_v2 = vadd.f32 %v1030_v60, %v2971_v46  ;;  %v1032_v58 = vpop.f32.mrb[49].mxu0 }
 0x233   :  { %v2395_v3 = vadd.f32 %v1032_v58, %v2975_v47  ;;  %v1034_v5 = vpop.f32.mrb[50].mxu0  ;;  %1557 = vmatprep.mubr.bf16.mxu1 %v1321_v63  ;;  %2334 = vmatprep.mubr.msk.bf16.mxu0 %vm808_vm3, %v1331_v1  ;;  %v3051_v63 = vld [vmem:[%s3129_s6] ss:$0 sm:$0xff] }
 0x234   :  { %v2396_v6 = vadd.f32 %v1034_v5, %v2971_v46  ;;  %v1036_v8 = vpop.f32.mrb[51].mxu0  ;;  %1558 = vmatmul.mubr.bf16.gmra.mrb[76].mxu1 %v1320_v31  ;;  %2335 = vmatmul.mubr.msk.bf16.gmra.mrb[76].mxu0 %vm808_vm3, %v1334_v45  ;;  %v1287_v34 = vmax.f32 %v2394_v2, 0.0 }
 0x235   :  { %v2397_v9 = vadd.f32 %v1036_v8, %v2975_v47  ;;  %v1288_v23 = vmax.f32 %v2395_v3, 0.0 }
 0x236   :  { %v1290_v4 = vmax.f32 %v2396_v6, 0.0 }
 0x237   :  { %v1291_v11 = vmax.f32 %v2397_v9, 0.0 }
 0x238   :  { %v1323_v12 = vpack.c.bf16 %v1290_v4, %v1287_v34 }
 0x239   :  { %v1324_v17 = vpack.c.bf16 %v1291_v11, %v1288_v23  ;;  %v1040_v19 = vpop.f32.mrb[52].mxu0 }
 0x23a   :  { %v2398_v38 = vadd.f32 %v1040_v19, %v2971_v46  ;;  %v1042_v21 = vpop.f32.mrb[53].mxu0 }
 0x23b   :  { %v2399_v61 = vadd.f32 %v1042_v21, %v2975_v47  ;;  %v1044_v22 = vpop.f32.mrb[54].mxu0  ;;  %1565 = vmatprep.mubr.bf16.mxu1 %v1324_v17 }
 0x23c   :  { %v2400_v24 = vadd.f32 %v1044_v22, %v2971_v46  ;;  %v1046_v25 = vpop.f32.mrb[55].mxu0  ;;  %1566 = vmatmul.mubr.bf16.gmra.mrb[80].mxu1 %v1323_v12  ;;  %v1293_v33 = vmax.f32 %v2398_v38, 0.0 }
 0x23d   :  { %v2401_v32 = vadd.f32 %v1046_v25, %v2975_v47  ;;  %v1294_v37 = vmax.f32 %v2399_v61, 0.0 }
 0x23e   :  { %v1296_v36 = vmax.f32 %v2400_v24, 0.0 }
 0x23f   :  { %v1297_v28 = vmax.f32 %v2401_v32, 0.0 }
 0x240   :  { %v1326_v39 = vpack.c.bf16 %v1296_v36, %v1293_v33 }
 0x241   :  { %v1327_v40 = vpack.c.bf16 %v1297_v28, %v1294_v37  ;;  %v1050_v42 = vpop.f32.mrb[56].mxu0 }
 0x242   :  { %v2402_v30 = vadd.f32 %v1050_v42, %v2971_v46  ;;  %v1052_v15 = vpop.f32.mrb[57].mxu0 }
 0x243   :  { %v2403_v13 = vadd.f32 %v1052_v15, %v2975_v47  ;;  %v1054_v16 = vpop.f32.mrb[58].mxu0  ;;  %1573 = vmatprep.mubr.bf16.mxu1 %v1327_v40 }
 0x244   :  { %v2404_v48 = vadd.f32 %v1054_v16, %v2971_v46  ;;  %v1056_v7 = vpop.f32.mrb[59].mxu0  ;;  %1574 = vmatmul.mubr.bf16.gmra.mrb[84].mxu1 %v1326_v39  ;;  %v1299_v18 = vmax.f32 %v2402_v30, 0.0 }
 0x245   :  { %v2405_v14 = vadd.f32 %v1056_v7, %v2975_v47  ;;  %v1300_v20 = vmax.f32 %v2403_v13, 0.0 }
 0x246   :  { %v1302_v49 = vmax.f32 %v2404_v48, 0.0 }
 0x247   :  { %v1303_v50 = vmax.f32 %v2405_v14, 0.0 }
 0x248   :  { %v1329_v52 = vpack.c.bf16 %v1302_v49, %v1299_v18 }
 0x249   :  { %v1330_v51 = vpack.c.bf16 %v1303_v50, %v1300_v20  ;;  %v1060_v53 = vpop.f32.mrb[60].mxu0 }
 0x24a   :  { %v2406_v41 = vadd.f32 %v1060_v53, %v2971_v46  ;;  %v1062_v54 = vpop.f32.mrb[61].mxu0 }
 0x24b   :  { %v2407_v55 = vadd.f32 %v1062_v54, %v2975_v47  ;;  %v1064_v56 = vpop.f32.mrb[62].mxu0  ;;  %1581 = vmatprep.mubr.bf16.mxu1 %v1330_v51 }
 0x24c   :  { %v2408_v43 = vadd.f32 %v1064_v56, %v2971_v46  ;;  %v1066_v35 = vpop.f32.mrb[63].mxu0  ;;  %1582 = vmatmul.mubr.bf16.gmra.mrb[88].mxu1 %v1329_v52  ;;  %v1305_v57 = vmax.f32 %v2406_v41, 0.0 }
 0x24d   :  { %v2409_v10 = vadd.f32 %v1066_v35, %v2975_v47  ;;  %v1306_v59 = vmax.f32 %v2407_v55, 0.0 }
 0x24e   :  { %v1308_v27 = vmax.f32 %v2408_v43, 0.0 }
 0x24f   :  { %v1309_v44 = vmax.f32 %v2409_v10, 0.0 }
 0x250   :  { %v1332_v26 = vpack.c.bf16 %v1308_v27, %v1305_v57 }
 0x251   :  { %v1333_v29 = vpack.c.bf16 %v1309_v44, %v1306_v59 }
 0x253   :  { %1589 = vmatprep.mubr.bf16.mxu1 %v1333_v29 }
 0x254   :  { %1590 = vmatmul.mubr.bf16.gmra.mrb[92].mxu1 %v1332_v26 }
 0x2ef   :  { %v2204_v62 = vpop.f32.mrb[64].mxu1  ;;  %v2324_v31 = vpop.f32.mrb[64].mxu0 }
 0x2f0   :  { %v2205_v45 = vpop.f32.mrb[65].mxu1  ;;  %v1632_v46 = vpop.f32.mrb[65].mxu0 }
 0x2f1   :  { %v2206_v1 = vadd.f32 %v2205_v45, %v2204_v62  ;;  %v2207_v60 = vpop.f32.mrb[66].mxu1  ;;  %v2325_v47 = vpop.f32.mrb[66].mxu0 }
 0x2f2   :  { %v2208_v2 = vpop.f32.mrb[67].mxu1  ;;  %v1635_v58 = vpop.f32.mrb[67].mxu0 }
 0x2f3   :  { %v1536_v3 = vadd.f32 %v2206_v1, %v3051_v63  ;;  %v2209_v5 = vadd.f32 %v2208_v2, %v2207_v60 }
 0x2f5   :  { %v1633_v6 = vadd.f32 %v1632_v46, %v1536_v3  ;;  %v1539_v8 = vadd.f32 %v2209_v5, %v3051_v63 }
 0x2f7   :  { %v1636_v9 = vadd.f32 %v1635_v58, %v1539_v8  ;;  %v2210_v34 = vpop.f32.mrb[68].mxu1  ;;  %v2328_v4 = vpop.f32.mrb[68].mxu0  ;;  %v1695_v12 = vmax.f32 %v1633_v6, 0.0 }
 0x2f8   :  { %v2211_v23 = vpop.f32.mrb[69].mxu1  ;;  %v1648_v11 = vpop.f32.mrb[69].mxu0 }
 0x2f9   :  { %v1696_v17 = vmax.f32 %v1636_v9, 0.0  ;;  %v2212_v19 = vadd.f32 %v2211_v23, %v2210_v34  ;;  %v2213_v38 = vpop.f32.mrb[70].mxu1  ;;  %v2329_v21 = vpop.f32.mrb[70].mxu0 }
 0x2fa   :  { %v2214_v61 = vpop.f32.mrb[71].mxu1  ;;  %v1651_v22 = vpop.f32.mrb[71].mxu0 }
 0x2fb   :  { %v1711_v24 = vpack.c.bf16 %v1696_v17, %v1695_v12  ;;  %v1544_v25 = vadd.f32 %v2212_v19, %v3051_v63  ;;  %v2215_v32 = vadd.f32 %v2214_v61, %v2213_v38 }
 0x2fd   :  { %v1641_v33 = vadd.f32 %v2324_v31, %v1544_v25  ;;  %v1547_v36 = vadd.f32 %v2215_v32, %v3051_v63  ;;  %2342 = vmatprep.mubr.msk.bf16.mxu1 %vm1742_vm4, %v1711_v24 }
 0x2ff   :  { %v1644_v37 = vadd.f32 %v2325_v47, %v1547_v36  ;;  %v2216_v28 = vpop.f32.mrb[72].mxu1  ;;  %v2332_v39 = vpop.f32.mrb[72].mxu0  ;;  %v1697_v30 = vmax.f32 %v1641_v33, 0.0 }
 0x300   :  { %v2217_v40 = vpop.f32.mrb[73].mxu1  ;;  %v1664_v42 = vpop.f32.mrb[73].mxu0 }
 0x301   :  { %v1698_v15 = vmax.f32 %v1644_v37, 0.0  ;;  %v2218_v13 = vadd.f32 %v2217_v40, %v2216_v28  ;;  %v2219_v16 = vpop.f32.mrb[74].mxu1  ;;  %v2333_v48 = vpop.f32.mrb[74].mxu0 }
 0x302   :  { %v2220_v7 = vpop.f32.mrb[75].mxu1  ;;  %v1667_v14 = vpop.f32.mrb[75].mxu0 }
 0x303   :  { %v1712_v18 = vpack.c.bf16 %v1698_v15, %v1697_v30  ;;  %v1552_v49 = vadd.f32 %v2218_v13, %v3051_v63  ;;  %v2221_v20 = vadd.f32 %v2220_v7, %v2219_v16 }
 0x305   :  { %v1649_v50 = vadd.f32 %v1648_v11, %v1552_v49  ;;  %v1555_v52 = vadd.f32 %v2221_v20, %v3051_v63  ;;  %2343 = vmatmul.mubr.msk.bf16.vlgmr.msra.gmra.mrb[96].mxu1 %vm1742_vm4, %v1712_v18 }
 0x307   :  { %v1652_v51 = vadd.f32 %v1651_v22, %v1555_v52  ;;  %v2222_v53 = vpop.f32.mrb[76].mxu1  ;;  %v3061_v41 = vpop.f32.mrb[76].mxu0  ;;  %v1699_v56 = vmax.f32 %v1649_v50, 0.0 }
 0x308   :  { %v2223_v54 = vpop.f32.mrb[77].mxu1  ;;  %v1680_v55 = vpop.f32.mrb[77].mxu0 }
 0x309   :  { %v1700_v43 = vmax.f32 %v1652_v51, 0.0  ;;  %v2224_v35 = vadd.f32 %v2223_v54, %v2222_v53  ;;  %v2225_v10 = vpop.f32.mrb[78].mxu1  ;;  %v3063_v57 = vpop.f32.mrb[78].mxu0 }
 0x30a   :  { %v2226_v27 = vpop.f32.mrb[79].mxu1  ;;  %v1683_v59 = vpop.f32.mrb[79].mxu0 }
 0x30b   :  { %v1713_v44 = vpack.c.bf16 %v1700_v43, %v1699_v56  ;;  %v1560_v26 = vadd.f32 %v2224_v35, %v3051_v63  ;;  %v2227_v29 = vadd.f32 %v2226_v27, %v2225_v10 }
 0x30d   :  { %v1657_v62 = vadd.f32 %v2328_v4, %v1560_v26  ;;  %v1563_v31 = vadd.f32 %v2227_v29, %v3051_v63  ;;  %2346 = vmatprep.mubr.msk.bf16.mxu1 %vm1742_vm4, %v1713_v44  ;;  %v3086_v26 = vld [vmem:[%s3131_s8] ss:$0 sm:$0xff] }
 0x30f   :  { %v1660_v45 = vadd.f32 %v2329_v21, %v1563_v31  ;;  %v2228_v46 = vpop.f32.mrb[80].mxu1  ;;  %v1701_v60 = vmax.f32 %v1657_v62, 0.0 }
 0x310   :  { %v2229_v1 = vpop.f32.mrb[81].mxu1 }
 0x311   :  { %v1702_v47 = vmax.f32 %v1660_v45, 0.0  ;;  %v2230_v2 = vadd.f32 %v2229_v1, %v2228_v46  ;;  %v2231_v58 = vpop.f32.mrb[82].mxu1 }
 0x312   :  { %v2232_v3 = vpop.f32.mrb[83].mxu1 }
 0x313   :  { %v1714_v5 = vpack.c.bf16 %v1702_v47, %v1701_v60  ;;  %v1568_v6 = vadd.f32 %v2230_v2, %v3051_v63  ;;  %v2233_v8 = vadd.f32 %v2232_v3, %v2231_v58  ;;  %v2578_v2 = vmov 0.0  }
 0x314   :  { %2358 = vmatprep.subr.bf16.mxu0 %v2578_v2  ;;  %2374 = vmatprep.mubr.msk.bf16.mxu0 %vm2579_vm5, %v2578_v2 }
 0x315   :  { %v1665_v9 = vadd.f32 %v1664_v42, %v1568_v6  ;;  %v1571_v34 = vadd.f32 %v2233_v8, %v3051_v63  ;;  %2347 = vmatmul.mubr.msk.bf16.gmra.mrb[100].mxu1 %vm1742_vm4, %v1714_v5 }
 0x317   :  { %v1668_v4 = vadd.f32 %v1667_v14, %v1571_v34  ;;  %v2234_v23 = vpop.f32.mrb[84].mxu1  ;;  %v1703_v12 = vmax.f32 %v1665_v9, 0.0 }
 0x318   :  { %v2235_v11 = vpop.f32.mrb[85].mxu1 }
 0x319   :  { %v1704_v17 = vmax.f32 %v1668_v4, 0.0  ;;  %v2236_v19 = vadd.f32 %v2235_v11, %v2234_v23  ;;  %v2237_v38 = vpop.f32.mrb[86].mxu1 }
 0x31a   :  { %v2238_v21 = vpop.f32.mrb[87].mxu1 }
 0x31b   :  { %v1715_v61 = vpack.c.bf16 %v1704_v17, %v1703_v12  ;;  %v1576_v22 = vadd.f32 %v2236_v19, %v3051_v63  ;;  %v2239_v24 = vadd.f32 %v2238_v21, %v2237_v38 }
 0x31d   :  { %v1673_v25 = vadd.f32 %v2332_v39, %v1576_v22  ;;  %v1579_v32 = vadd.f32 %v2239_v24, %v3051_v63  ;;  %2350 = vmatprep.mubr.msk.bf16.mxu1 %vm1742_vm4, %v1715_v61 }
 0x31f   :  { %v1676_v33 = vadd.f32 %v2333_v48, %v1579_v32  ;;  %v2240_v36 = vpop.f32.mrb[88].mxu1  ;;  %v1705_v28 = vmax.f32 %v1673_v25, 0.0 }
 0x320   :  { %v2241_v37 = vpop.f32.mrb[89].mxu1 }
 0x321   :  { %v1706_v40 = vmax.f32 %v1676_v33, 0.0  ;;  %v2242_v42 = vadd.f32 %v2241_v37, %v2240_v36  ;;  %v2243_v30 = vpop.f32.mrb[90].mxu1 }
 0x322   :  { %v2244_v15 = vpop.f32.mrb[91].mxu1 }
 0x323   :  { %v1716_v13 = vpack.c.bf16 %v1706_v40, %v1705_v28  ;;  %v1584_v16 = vadd.f32 %v2242_v42, %v3051_v63  ;;  %v2245_v7 = vadd.f32 %v2244_v15, %v2243_v30 }
 0x325   :  { %v1681_v14 = vadd.f32 %v1680_v55, %v1584_v16  ;;  %v1587_v18 = vadd.f32 %v2245_v7, %v3051_v63  ;;  %2351 = vmatmul.mubr.msk.bf16.gmra.mrb[104].mxu1 %vm1742_vm4, %v1716_v13 }
 0x327   :  { %v1684_v39 = vadd.f32 %v1683_v59, %v1587_v18  ;;  %v2246_v49 = vpop.f32.mrb[92].mxu1  ;;  %v1707_v48 = vmax.f32 %v1681_v14, 0.0 }
 0x328   :  { %v2247_v20 = vpop.f32.mrb[93].mxu1 }
 0x329   :  { %v1708_v50 = vmax.f32 %v1684_v39, 0.0  ;;  %v2248_v52 = vadd.f32 %v2247_v20, %v2246_v49  ;;  %v2249_v51 = vpop.f32.mrb[94].mxu1 }
 0x32a   :  { %v2250_v53 = vpop.f32.mrb[95].mxu1 }
 0x32b   :  { %v1717_v54 = vpack.c.bf16 %v1708_v50, %v1707_v48  ;;  %v1592_v56 = vadd.f32 %v2248_v52, %v3051_v63  ;;  %v2251_v43 = vadd.f32 %v2250_v53, %v2249_v51  ;;  %v1921_v50 = vld [vmem:[%s3133_s10] sm:$0x7] }
 0x32c   :  { %1924 = vperm.xlu1 %2451, %v1921_v50  }
 0x32d   :  { %v1689_v35 = vadd.f32 %v3061_v41, %v1592_v56  ;;  %v1595_v55 = vadd.f32 %v2251_v43, %v3051_v63  ;;  %2354 = vmatprep.mubr.msk.bf16.mxu1 %vm1742_vm4, %v1717_v54 }
 0x32f   :  { %v1692_v10 = vadd.f32 %v3063_v57, %v1595_v55  ;;  %v1709_v27 = vmax.f32 %v1689_v35, 0.0 }
 0x331   :  { %v1710_v59 = vmax.f32 %v1692_v10, 0.0 }
 0x333   :  { %v1718_v44 = vpack.c.bf16 %v1710_v59, %v1709_v27 }
 0x335   :  { %2355 = vmatmul.mubr.msk.bf16.gmra.mrb[108].mxu1 %vm1742_vm4, %v1718_v44 }
 0x3d8   :  { %v2344_v29 = vpop.f32.mrb[96].mxu1 }
 0x3d9   :  { %v1801_v62 = vpop.f32.mrb[97].mxu1  ;;  %v1810_v57 = vadd.f32 %v2344_v29, %v3086_v26 }
 0x3da   :  { %v2345_v31 = vpop.f32.mrb[98].mxu1  ;;  %v1802_v41 = vadd.f32 %v3086_v26, %v1801_v62 }
 0x3db   :  { %v1804_v63 = vpop.f32.mrb[99].mxu1  ;;  %v1866_v60 = vmax.f32 %v1810_v57, 0.0  ;;  %v1813_v47 = vadd.f32 %v2345_v31, %v3086_v26 }
 0x3dc   :  { %v1805_v45 = vadd.f32 %v3086_v26, %v1804_v63  ;;  %v1864_v46 = vmax.f32 %v1802_v41, 0.0 }
 0x3dd   :  { %v1867_v58 = vmax.f32 %v1813_v47, 0.0  ;;  %v1920_v47 = vld [vmem:[%s3132_s9] sm:$0x3] }
 0x3de   :  { %1880 = vxpose.xlu0.b32.start [1/16] %v1864_v46, 128  ;;  %v1865_v1 = vmax.f32 %v1805_v45, 0.0 }
 0x3e2   :  { %1881 = vxpose.xlu0.b32.cont [2/16] %v1865_v1, 128 }
 0x3e6   :  { %1882 = vxpose.xlu0.b32.cont [3/16] %v1866_v60, 128 }
 0x3e8   :  { %v2348_v3 = vpop.f32.mrb[100].mxu1 }
 0x3e9   :  { %v1817_v5 = vpop.f32.mrb[101].mxu1  ;;  %v1826_v23 = vadd.f32 %v2348_v3, %v3086_v26 }
 0x3ea   :  { %v1818_v6 = vadd.f32 %v3086_v26, %v1817_v5  ;;  %v2349_v8 = vpop.f32.mrb[102].mxu1  ;;  %1883 = vxpose.xlu0.b32.cont [4/16] %v1867_v58, 128  ;;  %v1925_v58 = vpop.permute.xlu1 %1924 }
 0x3eb   :  { %v1820_v9 = vpop.f32.mrb[103].mxu1  ;;  %v1870_v12 = vmax.f32 %v1826_v23, 0.0  ;;  %v1829_v17 = vadd.f32 %v2349_v8, %v3086_v26 }
 0x3ec   :  { %v1868_v34 = vmax.f32 %v1818_v6, 0.0  ;;  %v1821_v4 = vadd.f32 %v3086_v26, %v1820_v9 }
 0x3ed   :  { %v1871_v19 = vmax.f32 %v1829_v17, 0.0 }
 0x3ee   :  { %1884 = vxpose.xlu0.b32.cont [5/16] %v1868_v34, 128  ;;  %v1869_v11 = vmax.f32 %v1821_v4, 0.0 }
 0x3f2   :  { %1885 = vxpose.xlu0.b32.cont [6/16] %v1869_v11, 128 }
 0x3f6   :  { %1886 = vxpose.xlu0.b32.cont [7/16] %v1870_v12, 128 }
 0x3f8   :  { %v2352_v38 = vpop.f32.mrb[104].mxu1 }
 0x3f9   :  { %v1833_v21 = vpop.f32.mrb[105].mxu1  ;;  %v1842_v33 = vadd.f32 %v2352_v38, %v3086_v26 }
 0x3fa   :  { %v1834_v61 = vadd.f32 %v3086_v26, %v1833_v21  ;;  %v2353_v22 = vpop.f32.mrb[106].mxu1  ;;  %1887 = vxpose.xlu0.b32.cont [8/16] %v1871_v19, 128 }
 0x3fb   :  { %v1836_v24 = vpop.f32.mrb[107].mxu1  ;;  %v1874_v37 = vmax.f32 %v1842_v33, 0.0  ;;  %v1845_v28 = vadd.f32 %v2353_v22, %v3086_v26 }
 0x3fc   :  { %v1872_v25 = vmax.f32 %v1834_v61, 0.0  ;;  %v1837_v32 = vadd.f32 %v3086_v26, %v1836_v24 }
 0x3fd   :  { %v1875_v40 = vmax.f32 %v1845_v28, 0.0 }
 0x3fe   :  { %1888 = vxpose.xlu0.b32.cont [9/16] %v1872_v25, 128  ;;  %v1873_v36 = vmax.f32 %v1837_v32, 0.0 }
 0x402   :  { %1889 = vxpose.xlu0.b32.cont [10/16] %v1873_v36, 128 }
 0x406   :  { %1890 = vxpose.xlu0.b32.cont [11/16] %v1874_v37, 128 }
 0x408   :  { %v2356_v42 = vpop.f32.mrb[108].mxu1 }
 0x409   :  { %v1849_v30 = vpop.f32.mrb[109].mxu1  ;;  %v1858_v18 = vadd.f32 %v2356_v42, %v3086_v26 }
 0x40a   :  { %v1850_v15 = vadd.f32 %v3086_v26, %v1849_v30  ;;  %v2357_v13 = vpop.f32.mrb[110].mxu1  ;;  %1891 = vxpose.xlu0.b32.cont [12/16] %v1875_v40, 128 }
 0x40b   :  { %v1852_v16 = vpop.f32.mrb[111].mxu1  ;;  %v1878_v49 = vmax.f32 %v1858_v18, 0.0  ;;  %v1861_v20 = vadd.f32 %v2357_v13, %v3086_v26 }
 0x40c   :  { %v1876_v7 = vmax.f32 %v1850_v15, 0.0  ;;  %v1853_v14 = vadd.f32 %v3086_v26, %v1852_v16 }
 0x40d   :  { %v1879_v48 = vmax.f32 %v1861_v20, 0.0 }
 0x40e   :  { %1892 = vxpose.xlu0.b32.cont [13/16] %v1876_v7, 128  ;;  %v1877_v39 = vmax.f32 %v1853_v14, 0.0 }
 0x412   :  { %1893 = vxpose.xlu0.b32.cont [14/16] %v1877_v39, 128 }
 0x416   :  { %1894 = vxpose.xlu0.b32.cont [15/16] %v1878_v49, 128 }
 0x41a   :  { %1895 = vxpose.xlu0.b32.end [16/16] %v1879_v48, 128 }
 0x443   :  { %2452 = vset.pattern.permute.xlu0 %v2577_v0 }
 0x45e   :  { %v1896_v52 = vpop.trf.xlu0 }
 0x462   :  { %v1897_v51 = vpop.trf.xlu0 }
 0x463   :  { %v1912_v53 = vpack.c.bf16 %v1897_v51, %v1896_v52 }
 0x465   :  { %2359 = vmatpush3.bf16.msra.mxu0 %v1912_v53 }
 0x466   :  { %v1898_v54 = vpop.trf.xlu0  ;;  %2360 = vmatprep.subr.bf16.mxu0 %v2578_v2 }
 0x46a   :  { %v1899_v56 = vpop.trf.xlu0 }
 0x46b   :  { %v1913_v43 = vpack.c.bf16 %v1899_v56, %v1898_v54 }
 0x46d   :  { %2361 = vmatpush3.bf16.msra.mxu0 %v1913_v43 }
 0x46e   :  { %v1900_v35 = vpop.trf.xlu0  ;;  %2362 = vmatprep.subr.bf16.mxu0 %v2578_v2 }
 0x472   :  { %v1901_v55 = vpop.trf.xlu0 }
 0x473   :  { %v1914_v10 = vpack.c.bf16 %v1901_v55, %v1900_v35 }
 0x475   :  { %2363 = vmatpush3.bf16.msra.mxu0 %v1914_v10 }
 0x476   :  { %v1902_v27 = vpop.trf.xlu0  ;;  %2364 = vmatprep.subr.bf16.mxu0 %v2578_v2 }
 0x47a   :  { %v1903_v0 = vpop.trf.xlu0 }
 0x47b   :  { %v1915_v59 = vpack.c.bf16 %v1903_v0, %v1902_v27 }
 0x47d   :  { %2365 = vmatpush3.bf16.msra.mxu0 %v1915_v59 }
 0x47e   :  { %v1904_v44 = vpop.trf.xlu0  ;;  %2366 = vmatprep.subr.bf16.mxu0 %v2578_v2 }
 0x482   :  { %v1905_v26 = vpop.trf.xlu0 }
 0x483   :  { %v1916_v29 = vpack.c.bf16 %v1905_v26, %v1904_v44 }
 0x485   :  { %2367 = vmatpush3.bf16.msra.mxu0 %v1916_v29 }
 0x486   :  { %v1906_v62 = vpop.trf.xlu0  ;;  %2368 = vmatprep.subr.bf16.mxu0 %v2578_v2 }
 0x48a   :  { %v1907_v31 = vpop.trf.xlu0 }
 0x48b   :  { %v1917_v41 = vpack.c.bf16 %v1907_v31, %v1906_v62 }
 0x48d   :  { %2369 = vmatpush3.bf16.msra.mxu0 %v1917_v41 }
 0x48e   :  { %v1908_v63 = vpop.trf.xlu0  ;;  %2370 = vmatprep.subr.bf16.mxu0 %v2578_v2 }
 0x492   :  { %v1909_v45 = vpop.trf.xlu0 }
 0x493   :  { %v1918_v46 = vpack.c.bf16 %v1909_v45, %v1908_v63 }
 0x495   :  { %2371 = vmatpush3.bf16.msra.mxu0 %v1918_v46 }
 0x496   :  { %v1910_v57 = vpop.trf.xlu0  ;;  %2372 = vmatprep.subr.bf16.mxu0 %v2578_v2 }
 0x49a   :  { %v1911_v1 = vpop.trf.xlu0 }
 0x49b   :  { %v1919_v60 = vpack.c.bf16 %v1911_v1, %v1910_v57 }
 0x49d   :  { %2373 = vmatpush3.bf16.msra.mxu0 %v1919_v60 }
 0x4a0   :  { %2375 = vmatmul.mubr.bf16.vlgmr.msra.gmra.mrb[80].mxu0 %v1920_v47 }
 0x573   :  { %v1961_v3 = vpop.f32.mrb[80].mxu0 }
 0x574   :  { %v1962_v5 = vadd.f32 %v1961_v3, %v1925_v58  ;;  %v2376_v6 = vpop.f32.mrb[81].mxu0 }
 0x575   :  { %v1964_v8 = vpop.f32.mrb[82].mxu0 }
 0x576   :  { %1967 = vst [vmem:[%s3134_s11] sm:$0x7] %v1962_v5  ;;  %v2377_v9 = vpop.f32.mrb[83].mxu0 }
 0x577   :  { %1972 = vsyncpa [#allocation3], 1 }

</bundles_post_ra>
